<compile_context>
chip_gen: v5e
topology: v5e:2x2
jax: 0.10.0
libtpu: 0.0.40
codegen_flags: <defaults>
</compile_context>

<pallas_src>
import jax
import jax.numpy as jnp
from jax import lax
from jax.experimental import pallas as pl
from jax.experimental.pallas import tpu as pltpu

# ----------------------------- static config --------------------------------
IMAGE = 64                       # CONFIG['IMAGE_RESIZE']
KH = KW = 5                      # conv kernel
STRIDE = 3                       # conv stride
POOL = 6                         # maxpool kernel == stride
C_OUT = 3                        # conv output channels
HO = (IMAGE - KH) // STRIDE + 1  # conv output spatial      -> 20
PO = HO // POOL                  # pooled spatial           -> 3
N_POOLED = PO * PO               # pooled pixels            -> 9
N_WIN = POOL * POOL              # conv pixels per pool win -> 36
K25 = KH * KW                    # conv taps                -> 25
PK = N_POOLED * K25              # im2col cols per window   -> 225
N_FEAT = C_OUT * N_POOLED        # flattened features       -> 27
HIDDEN = 84
N_CLASS = 2
OUT_PAD = 128                    # lane-dense padded output width
BN_EPS = 1e-5
GRP = STRIDE * POOL              # image rows spanned by one pooled row  -> 18
SLAB = PO * GRP                  # image rows spanned by all pooled rows -> 54
MAX_B_TILE = 256                 # bf16 patch block ~4.7 MB (x2 buffers) fits all gens' default VMEM
B_ALIGN = 16                     # bf16 sublane packing


def _round_up(v, m):
    return (v + m - 1) // m * m


# ------------------------------ fused Pallas kernel ---------------------------
def _fused_kernel(p_ref, wbig_ref, bbig_ref, w1_ref, b1_ref, w2_ref, b2_ref,
                  o_ref):
    """Per batch tile: streamed conv+maxpool, then (BN-folded) FC1 + ReLU + FC2."""
    w_big = wbig_ref[...]                                    # (225, 27) bf16, resident

    # Conv + MaxPool streamed per pool window: one MXU matmul per window with a
    # running VPU max (no (36*bt, 27) intermediate, ~2x fewer live vregs).
    acc = jnp.dot(p_ref[0], w_big, preferred_element_type=jnp.float32)
    for w in range(1, N_WIN):
        acc = jnp.maximum(
            acc, jnp.dot(p_ref[w], w_big, preferred_element_type=jnp.float32))

    # Bias + ReLU after the max (bias is a per-column constant, relu monotone).
    pooled = jnp.maximum(acc + bbig_ref[...], 0.0)           # (bt, 27) f32, order c*9+p
    # BatchNorm (eval) is folded into w1_eff / b1_eff at param-prep time.

    h = jnp.dot(pooled.astype(jnp.bfloat16), w1_ref[...],
                preferred_element_type=jnp.float32)
    h = jnp.maximum(h + b1_ref[...], 0.0)
    # TODO(synk): nn.Dropout is identity at inference; training-mode dropout omitted.
    o_ref[...] = (jnp.dot(h.astype(jnp.bfloat16), w2_ref[...],
                          preferred_element_type=jnp.float32) + b2_ref[...])


# ------------------------- one-time parameter preparation ---------------------
def prepare_params(p):
    """Fold layouts / BatchNorm into matmul-ready bf16 weights (done once)."""
    hp = lax.Precision.HIGHEST
    w_taps = p["wc"].reshape(C_OUT, KH, KW).astype(jnp.float32)      # (3, 5, 5)
    eye3 = jnp.eye(PO, dtype=jnp.float32)
    # w_big[(pr,kr,pc,kc), (c,qr,qc)] = W[c,kr,kc] * (pr==qr) * (pc==qc)
    # Row order matches the wrapper's patch column order (pr, kr, pc, kc);
    # column order (c*9 + qr*3 + qc) is PyTorch's NCHW Flatten order.
    w_big = jnp.einsum("ckl,pq,rs->pkrlcqs", w_taps, eye3, eye3).reshape(PK, N_FEAT)
    b_big = jnp.repeat(p["bc"], N_POOLED).reshape(1, N_FEAT)         # (1, 27)

    inv_std = 1.0 / jnp.sqrt(p["rvar"] + BN_EPS)
    scale = p["gamma"] * inv_std                                     # (3,)
    shift = p["beta"] - p["rmean"] * scale                           # (3,)
    scale_vec = jnp.repeat(scale, N_POOLED)                          # (27,) channel-major
    shift_vec = jnp.repeat(shift, N_POOLED)                          # (27,)

    # Fold BN affine into FC1:  (f*s + t) @ W1^T + b1 = f @ (s*W1^T) + (t@W1^T + b1)
    w1_t = p["w1"].T                                                 # (27, 84)
    w1_eff = scale_vec[:, None] * w1_t
    b1_eff = (p["b1"] + jnp.dot(shift_vec, w1_t, precision=hp)).reshape(1, HIDDEN)

    w2_pad = jnp.zeros((HIDDEN, OUT_PAD), jnp.float32).at[:, :N_CLASS].set(p["w2"].T)
    b2_pad = jnp.zeros((1, OUT_PAD), jnp.float32).at[0, :N_CLASS].set(p["b2"])
    return dict(w_big=w_big.astype(jnp.bfloat16),
                b_big=b_big.astype(jnp.float32),
                w1_eff=w1_eff.astype(jnp.bfloat16),
                b1_eff=b1_eff.astype(jnp.float32),
                w2_pad=w2_pad.astype(jnp.bfloat16),
                b2_pad=b2_pad.astype(jnp.float32))


# ------------------------------- forward wrapper -------------------------------
def cxr8net_forward(x, prep):
    n = x.shape[0]

    # Batch tile: big for throughput, but keep t >= 2 for mid-size batches so both
    # v7x TensorCores receive grid work (dimension_semantics=("parallel",)).
    if n <= B_ALIGN:
        b_tile = B_ALIGN
    else:
        b_tile = min(MAX_B_TILE, _round_up(pl.cdiv(n, 2), B_ALIGN))
    n_pad = _round_up(n, b_tile)
    t = n_pad // b_tile

    # --- bf16 im2col written once, directly in the kernel layout -------------
    # patches[w, b, (pr,kr,pc,kc)] = x[b, 18*pr + 3*wr + kr, 18*pc + 3*wc + kc]
    # built from slice / reshape / stack only (one copy fusion; no patches op,
    # no separate 7-D transpose pass).
    xb = x[:, 0, :, :].astype(jnp.bfloat16)                          # (n, 64, 64)
    xb = jnp.pad(xb, ((0, n_pad - n), (0, POOL), (0, POOL)))         # (n_pad, 70, 70)
    slabs = []
    for wr in range(POOL):
        for wc in range(POOL):
            s = xb[:, 3 * wr:3 * wr + SLAB, 3 * wc:3 * wc + SLAB]    # (n_pad, 54, 54)
            s = s.reshape(n_pad, PO, GRP, PO, GRP)[:, :, :KH, :, :KW]
            slabs.append(s.reshape(n_pad, PK))                       # cols (pr,kr,pc,kc)
    patches = jnp.stack(slabs, axis=0)                               # (36, n_pad, 225) bf16

    out = pl.pallas_call(
        _fused_kernel,
        out_shape=jax.ShapeDtypeStruct((n_pad, OUT_PAD), jnp.float32),
        grid=(t,),
        in_specs=[
            pl.BlockSpec((N_WIN, b_tile, PK), lambda i: (0, i, 0)),
            pl.BlockSpec((PK, N_FEAT), lambda i: (0, 0)),
            pl.BlockSpec((1, N_FEAT), lambda i: (0, 0)),
            pl.BlockSpec((N_FEAT, HIDDEN), lambda i: (0, 0)),
            pl.BlockSpec((1, HIDDEN), lambda i: (0, 0)),
            pl.BlockSpec((HIDDEN, OUT_PAD), lambda i: (0, 0)),
            pl.BlockSpec((1, OUT_PAD), lambda i: (0, 0)),
        ],
        out_specs=pl.BlockSpec((b_tile, OUT_PAD), lambda i: (i, 0)),
        compiler_params=pltpu.CompilerParams(
            dimension_semantics=("parallel",)),
    )(patches, prep["w_big"], prep["b_big"], prep["w1_eff"], prep["b1_eff"],
      prep["w2_pad"], prep["b2_pad"])

    return out[:n, :N_CLASS]


# ------------------------- deterministic parameters --------------------------
def init_params(key):
    ks = jax.random.split(key, 10)
    return dict(
        wc=jax.random.normal(ks[0], (C_OUT, 1, KH, KW), jnp.float32) * 0.1,
        bc=jax.random.normal(ks[1], (C_OUT,), jnp.float32) * 0.1,
        # non-trivial eval-mode BatchNorm stats so the BN path is actually tested
        gamma=1.0 + 0.1 * jax.random.normal(ks[2], (C_OUT,), jnp.float32),
        beta=0.1 * jax.random.normal(ks[3], (C_OUT,), jnp.float32),
        rmean=0.1 * jax.random.normal(ks[4], (C_OUT,), jnp.float32),
        rvar=jax.random.uniform(ks[5], (C_OUT,), jnp.float32, 0.5, 1.5),
        w1=jax.random.normal(ks[6], (HIDDEN, N_FEAT), jnp.float32) / jnp.sqrt(N_FEAT),
        b1=jax.random.normal(ks[7], (HIDDEN,), jnp.float32) * 0.01,
        w2=jax.random.normal(ks[8], (N_CLASS, HIDDEN), jnp.float32) / jnp.sqrt(HIDDEN),
        b2=jax.random.normal(ks[9], (N_CLASS,), jnp.float32) * 0.01,
    )


# ------------------------------ pure-JAX reference ---------------------------
def reference_forward(x, p):
    hp = lax.Precision.HIGHEST
    conv = lax.conv_general_dilated(
        x, p["wc"], (STRIDE, STRIDE), "VALID",
        dimension_numbers=("NCHW", "OIHW", "NCHW"), precision=hp)
    conv = jnp.maximum(conv + p["bc"].reshape(1, C_OUT, 1, 1), 0.0)
    pool = lax.reduce_window(conv, -jnp.inf, lax.max,
                             (1, 1, POOL, POOL), (1, 1, POOL, POOL), "VALID")
    bn = ((pool - p["rmean"].reshape(1, -1, 1, 1))
          / jnp.sqrt(p["rvar"].reshape(1, -1, 1, 1) + BN_EPS)
          * p["gamma"].reshape(1, -1, 1, 1) + p["beta"].reshape(1, -1, 1, 1))
    feats = bn.reshape(x.shape[0], -1)                               # NCHW flatten
    h = jnp.maximum(jnp.dot(feats, p["w1"].T, precision=hp) + p["b1"], 0.0)
    return jnp.dot(h, p["w2"].T, precision=hp) + p["b2"]


if __name__ == "__main__":
    key = jax.random.PRNGKey(0)
    kx, kp = jax.random.split(key)
    x = jax.random.normal(kx, (2, 1, IMAGE, IMAGE), jnp.float32)     # NCHW
    params = init_params(kp)
    prep = prepare_params(params)          # one-time weight/BN prep (not per call)

    fwd = jax.jit(cxr8net_forward)
    out = jax.block_until_ready(fwd(x, prep))

    ref = reference_forward(x, params)
    assert out.shape == (2, N_CLASS), out.shape
    # bf16 matmul inputs (f32 accumulation): allow bf16-appropriate tolerance.
    if not bool(jnp.allclose(out, ref, atol=1e-2, rtol=1e-2)):
        raise AssertionError(f"mismatch vs reference:\n{out}\n{ref}")
    print("KERNEL_OK")
</pallas_src>

<mosaic_0001>
module attributes {stable_mosaic.version = 11 : i64} {
  func.func @_fused_kernel(%arg0: i32, %arg1: memref<36x16x225xbf16, #tpu.memory_space<vmem>>, %arg2: memref<225x27xbf16, #tpu.memory_space<vmem>>, %arg3: memref<1x27xf32, #tpu.memory_space<vmem>>, %arg4: memref<27x84xbf16, #tpu.memory_space<vmem>>, %arg5: memref<1x84xf32, #tpu.memory_space<vmem>>, %arg6: memref<84x128xbf16, #tpu.memory_space<vmem>>, %arg7: memref<1x128xf32, #tpu.memory_space<vmem>>, %arg8: memref<16x128xf32, #tpu.memory_space<vmem>>) attributes {dimension_semantics = [#tpu.dimension_semantics<parallel>], iteration_bounds = array<i64: 1>, scalar_prefetch = 0 : i64, scratch_operands = 0 : i64, tpu.core_type = #tpu.core_type<tc>, window_params = [{transform_indices = @transform_0, window_bounds = array<i64: 36, 16, 225>}, {pipeline_mode = #tpu.pipeline_mode<synchronous>, transform_indices = @transform_1, window_bounds = array<i64: 225, 27>}, {pipeline_mode = #tpu.pipeline_mode<synchronous>, transform_indices = @transform_2, window_bounds = array<i64: 1, 27>}, {pipeline_mode = #tpu.pipeline_mode<synchronous>, transform_indices = @transform_3, window_bounds = array<i64: 27, 84>}, {pipeline_mode = #tpu.pipeline_mode<synchronous>, transform_indices = @transform_4, window_bounds = array<i64: 1, 84>}, {pipeline_mode = #tpu.pipeline_mode<synchronous>, transform_indices = @transform_5, window_bounds = array<i64: 84, 128>}, {pipeline_mode = #tpu.pipeline_mode<synchronous>, transform_indices = @transform_6, window_bounds = array<i64: 1, 128>}, {transform_indices = @transform_7, window_bounds = array<i64: 16, 128>}]} {
    %c0 = arith.constant 0 : index
    %c0_0 = arith.constant 0 : index
    %0 = vector.load %arg2[%c0, %c0_0] : memref<225x27xbf16, #tpu.memory_space<vmem>>, vector<225x27xbf16>
    %c0_1 = arith.constant 0 : index
    %c0_2 = arith.constant 0 : index
    %c0_3 = arith.constant 0 : index
    %1 = vector.load %arg1[%c0_1, %c0_2, %c0_3] : memref<36x16x225xbf16, #tpu.memory_space<vmem>>, vector<1x16x225xbf16>
    %2 = vector.shape_cast %1 : vector<1x16x225xbf16> to vector<16x225xbf16>
    %cst = arith.constant dense<0.000000e+00> : vector<16x27xf32>
    %3 = tpu.matmul %2, %0, %cst {dimension_numbers = #tpu.dot_dimension_numbers<[1], [0], [0], [1], [0, 0, 1, 1], [], []>} : vector<16x225xbf16>, vector<225x27xbf16>, vector<16x27xf32> -> vector<16x27xf32>
    %c1 = arith.constant 1 : index
    %c0_4 = arith.constant 0 : index
    %c0_5 = arith.constant 0 : index
    %4 = vector.load %arg1[%c1, %c0_4, %c0_5] : memref<36x16x225xbf16, #tpu.memory_space<vmem>>, vector<1x16x225xbf16>
    %5 = vector.shape_cast %4 : vector<1x16x225xbf16> to vector<16x225xbf16>
    %cst_6 = arith.constant dense<0.000000e+00> : vector<16x27xf32>
    %6 = tpu.matmul %5, %0, %cst_6 {dimension_numbers = #tpu.dot_dimension_numbers<[1], [0], [0], [1], [0, 0, 1, 1], [], []>} : vector<16x225xbf16>, vector<225x27xbf16>, vector<16x27xf32> -> vector<16x27xf32>
    %7 = arith.maximumf %3, %6 : vector<16x27xf32>
    %c2 = arith.constant 2 : index
    %c0_7 = arith.constant 0 : index
    %c0_8 = arith.constant 0 : index
    %8 = vector.load %arg1[%c2, %c0_7, %c0_8] : memref<36x16x225xbf16, #tpu.memory_space<vmem>>, vector<1x16x225xbf16>
    %9 = vector.shape_cast %8 : vector<1x16x225xbf16> to vector<16x225xbf16>
    %cst_9 = arith.constant dense<0.000000e+00> : vector<16x27xf32>
    %10 = tpu.matmul %9, %0, %cst_9 {dimension_numbers = #tpu.dot_dimension_numbers<[1], [0], [0], [1], [0, 0, 1, 1], [], []>} : vector<16x225xbf16>, vector<225x27xbf16>, vector<16x27xf32> -> vector<16x27xf32>
    %11 = arith.maximumf %7, %10 : vector<16x27xf32>
    %c3 = arith.constant 3 : index
    %c0_10 = arith.constant 0 : index
    %c0_11 = arith.constant 0 : index
    %12 = vector.load %arg1[%c3, %c0_10, %c0_11] : memref<36x16x225xbf16, #tpu.memory_space<vmem>>, vector<1x16x225xbf16>
    %13 = vector.shape_cast %12 : vector<1x16x225xbf16> to vector<16x225xbf16>
    %cst_12 = arith.constant dense<0.000000e+00> : vector<16x27xf32>
    %14 = tpu.matmul %13, %0, %cst_12 {dimension_numbers = #tpu.dot_dimension_numbers<[1], [0], [0], [1], [0, 0, 1, 1], [], []>} : vector<16x225xbf16>, vector<225x27xbf16>, vector<16x27xf32> -> vector<16x27xf32>
    %15 = arith.maximumf %11, %14 : vector<16x27xf32>
    %c4 = arith.constant 4 : index
    %c0_13 = arith.constant 0 : index
    %c0_14 = arith.constant 0 : index
    %16 = vector.load %arg1[%c4, %c0_13, %c0_14] : memref<36x16x225xbf16, #tpu.memory_space<vmem>>, vector<1x16x225xbf16>
    %17 = vector.shape_cast %16 : vector<1x16x225xbf16> to vector<16x225xbf16>
    %cst_15 = arith.constant dense<0.000000e+00> : vector<16x27xf32>
    %18 = tpu.matmul %17, %0, %cst_15 {dimension_numbers = #tpu.dot_dimension_numbers<[1], [0], [0], [1], [0, 0, 1, 1], [], []>} : vector<16x225xbf16>, vector<225x27xbf16>, vector<16x27xf32> -> vector<16x27xf32>
    %19 = arith.maximumf %15, %18 : vector<16x27xf32>
    %c5 = arith.constant 5 : index
    %c0_16 = arith.constant 0 : index
    %c0_17 = arith.constant 0 : index
    %20 = vector.load %arg1[%c5, %c0_16, %c0_17] : memref<36x16x225xbf16, #tpu.memory_space<vmem>>, vector<1x16x225xbf16>
    %21 = vector.shape_cast %20 : vector<1x16x225xbf16> to vector<16x225xbf16>
    %cst_18 = arith.constant dense<0.000000e+00> : vector<16x27xf32>
    %22 = tpu.matmul %21, %0, %cst_18 {dimension_numbers = #tpu.dot_dimension_numbers<[1], [0], [0], [1], [0, 0, 1, 1], [], []>} : vector<16x225xbf16>, vector<225x27xbf16>, vector<16x27xf32> -> vector<16x27xf32>
    %23 = arith.maximumf %19, %22 : vector<16x27xf32>
    %c6 = arith.constant 6 : index
    %c0_19 = arith.constant 0 : index
    %c0_20 = arith.constant 0 : index
    %24 = vector.load %arg1[%c6, %c0_19, %c0_20] : memref<36x16x225xbf16, #tpu.memory_space<vmem>>, vector<1x16x225xbf16>
    %25 = vector.shape_cast %24 : vector<1x16x225xbf16> to vector<16x225xbf16>
    %cst_21 = arith.constant dense<0.000000e+00> : vector<16x27xf32>
    %26 = tpu.matmul %25, %0, %cst_21 {dimension_numbers = #tpu.dot_dimension_numbers<[1], [0], [0], [1], [0, 0, 1, 1], [], []>} : vector<16x225xbf16>, vector<225x27xbf16>, vector<16x27xf32> -> vector<16x27xf32>
    %27 = arith.maximumf %23, %26 : vector<16x27xf32>
    %c7 = arith.constant 7 : index
    %c0_22 = arith.constant 0 : index
    %c0_23 = arith.constant 0 : index
    %28 = vector.load %arg1[%c7, %c0_22, %c0_23] : memref<36x16x225xbf16, #tpu.memory_space<vmem>>, vector<1x16x225xbf16>
    %29 = vector.shape_cast %28 : vector<1x16x225xbf16> to vector<16x225xbf16>
    %cst_24 = arith.constant dense<0.000000e+00> : vector<16x27xf32>
    %30 = tpu.matmul %29, %0, %cst_24 {dimension_numbers = #tpu.dot_dimension_numbers<[1], [0], [0], [1], [0, 0, 1, 1], [], []>} : vector<16x225xbf16>, vector<225x27xbf16>, vector<16x27xf32> -> vector<16x27xf32>
    %31 = arith.maximumf %27, %30 : vector<16x27xf32>
    %c8 = arith.constant 8 : index
    %c0_25 = arith.constant 0 : index
    %c0_26 = arith.constant 0 : index
    %32 = vector.load %arg1[%c8, %c0_25, %c0_26] : memref<36x16x225xbf16, #tpu.memory_space<vmem>>, vector<1x16x225xbf16>
    %33 = vector.shape_cast %32 : vector<1x16x225xbf16> to vector<16x225xbf16>
    %cst_27 = arith.constant dense<0.000000e+00> : vector<16x27xf32>
    %34 = tpu.matmul %33, %0, %cst_27 {dimension_numbers = #tpu.dot_dimension_numbers<[1], [0], [0], [1], [0, 0, 1, 1], [], []>} : vector<16x225xbf16>, vector<225x27xbf16>, vector<16x27xf32> -> vector<16x27xf32>
    %35 = arith.maximumf %31, %34 : vector<16x27xf32>
    %c9 = arith.constant 9 : index
    %c0_28 = arith.constant 0 : index
    %c0_29 = arith.constant 0 : index
    %36 = vector.load %arg1[%c9, %c0_28, %c0_29] : memref<36x16x225xbf16, #tpu.memory_space<vmem>>, vector<1x16x225xbf16>
    %37 = vector.shape_cast %36 : vector<1x16x225xbf16> to vector<16x225xbf16>
    %cst_30 = arith.constant dense<0.000000e+00> : vector<16x27xf32>
    %38 = tpu.matmul %37, %0, %cst_30 {dimension_numbers = #tpu.dot_dimension_numbers<[1], [0], [0], [1], [0, 0, 1, 1], [], []>} : vector<16x225xbf16>, vector<225x27xbf16>, vector<16x27xf32> -> vector<16x27xf32>
    %39 = arith.maximumf %35, %38 : vector<16x27xf32>
    %c10 = arith.constant 10 : index
    %c0_31 = arith.constant 0 : index
    %c0_32 = arith.constant 0 : index
    %40 = vector.load %arg1[%c10, %c0_31, %c0_32] : memref<36x16x225xbf16, #tpu.memory_space<vmem>>, vector<1x16x225xbf16>
    %41 = vector.shape_cast %40 : vector<1x16x225xbf16> to vector<16x225xbf16>
    %cst_33 = arith.constant dense<0.000000e+00> : vector<16x27xf32>
    %42 = tpu.matmul %41, %0, %cst_33 {dimension_numbers = #tpu.dot_dimension_numbers<[1], [0], [0], [1], [0, 0, 1, 1], [], []>} : vector<16x225xbf16>, vector<225x27xbf16>, vector<16x27xf32> -> vector<16x27xf32>
    %43 = arith.maximumf %39, %42 : vector<16x27xf32>
    %c11 = arith.constant 11 : index
    %c0_34 = arith.constant 0 : index
    %c0_35 = arith.constant 0 : index
    %44 = vector.load %arg1[%c11, %c0_34, %c0_35] : memref<36x16x225xbf16, #tpu.memory_space<vmem>>, vector<1x16x225xbf16>
    %45 = vector.shape_cast %44 : vector<1x16x225xbf16> to vector<16x225xbf16>
    %cst_36 = arith.constant dense<0.000000e+00> : vector<16x27xf32>
    %46 = tpu.matmul %45, %0, %cst_36 {dimension_numbers = #tpu.dot_dimension_numbers<[1], [0], [0], [1], [0, 0, 1, 1], [], []>} : vector<16x225xbf16>, vector<225x27xbf16>, vector<16x27xf32> -> vector<16x27xf32>
    %47 = arith.maximumf %43, %46 : vector<16x27xf32>
    %c12 = arith.constant 12 : index
    %c0_37 = arith.constant 0 : index
    %c0_38 = arith.constant 0 : index
    %48 = vector.load %arg1[%c12, %c0_37, %c0_38] : memref<36x16x225xbf16, #tpu.memory_space<vmem>>, vector<1x16x225xbf16>
    %49 = vector.shape_cast %48 : vector<1x16x225xbf16> to vector<16x225xbf16>
    %cst_39 = arith.constant dense<0.000000e+00> : vector<16x27xf32>
    %50 = tpu.matmul %49, %0, %cst_39 {dimension_numbers = #tpu.dot_dimension_numbers<[1], [0], [0], [1], [0, 0, 1, 1], [], []>} : vector<16x225xbf16>, vector<225x27xbf16>, vector<16x27xf32> -> vector<16x27xf32>
    %51 = arith.maximumf %47, %50 : vector<16x27xf32>
    %c13 = arith.constant 13 : index
    %c0_40 = arith.constant 0 : index
    %c0_41 = arith.constant 0 : index
    %52 = vector.load %arg1[%c13, %c0_40, %c0_41] : memref<36x16x225xbf16, #tpu.memory_space<vmem>>, vector<1x16x225xbf16>
    %53 = vector.shape_cast %52 : vector<1x16x225xbf16> to vector<16x225xbf16>
    %cst_42 = arith.constant dense<0.000000e+00> : vector<16x27xf32>
    %54 = tpu.matmul %53, %0, %cst_42 {dimension_numbers = #tpu.dot_dimension_numbers<[1], [0], [0], [1], [0, 0, 1, 1], [], []>} : vector<16x225xbf16>, vector<225x27xbf16>, vector<16x27xf32> -> vector<16x27xf32>
    %55 = arith.maximumf %51, %54 : vector<16x27xf32>
    %c14 = arith.constant 14 : index
    %c0_43 = arith.constant 0 : index
    %c0_44 = arith.constant 0 : index
    %56 = vector.load %arg1[%c14, %c0_43, %c0_44] : memref<36x16x225xbf16, #tpu.memory_space<vmem>>, vector<1x16x225xbf16>
    %57 = vector.shape_cast %56 : vector<1x16x225xbf16> to vector<16x225xbf16>
    %cst_45 = arith.constant dense<0.000000e+00> : vector<16x27xf32>
    %58 = tpu.matmul %57, %0, %cst_45 {dimension_numbers = #tpu.dot_dimension_numbers<[1], [0], [0], [1], [0, 0, 1, 1], [], []>} : vector<16x225xbf16>, vector<225x27xbf16>, vector<16x27xf32> -> vector<16x27xf32>
    %59 = arith.maximumf %55, %58 : vector<16x27xf32>
    %c15 = arith.constant 15 : index
    %c0_46 = arith.constant 0 : index
    %c0_47 = arith.constant 0 : index
    %60 = vector.load %arg1[%c15, %c0_46, %c0_47] : memref<36x16x225xbf16, #tpu.memory_space<vmem>>, vector<1x16x225xbf16>
    %61 = vector.shape_cast %60 : vector<1x16x225xbf16> to vector<16x225xbf16>
    %cst_48 = arith.constant dense<0.000000e+00> : vector<16x27xf32>
    %62 = tpu.matmul %61, %0, %cst_48 {dimension_numbers = #tpu.dot_dimension_numbers<[1], [0], [0], [1], [0, 0, 1, 1], [], []>} : vector<16x225xbf16>, vector<225x27xbf16>, vector<16x27xf32> -> vector<16x27xf32>
    %63 = arith.maximumf %59, %62 : vector<16x27xf32>
    %c16 = arith.constant 16 : index
    %c0_49 = arith.constant 0 : index
    %c0_50 = arith.constant 0 : index
    %64 = vector.load %arg1[%c16, %c0_49, %c0_50] : memref<36x16x225xbf16, #tpu.memory_space<vmem>>, vector<1x16x225xbf16>
    %65 = vector.shape_cast %64 : vector<1x16x225xbf16> to vector<16x225xbf16>
    %cst_51 = arith.constant dense<0.000000e+00> : vector<16x27xf32>
    %66 = tpu.matmul %65, %0, %cst_51 {dimension_numbers = #tpu.dot_dimension_numbers<[1], [0], [0], [1], [0, 0, 1, 1], [], []>} : vector<16x225xbf16>, vector<225x27xbf16>, vector<16x27xf32> -> vector<16x27xf32>
    %67 = arith.maximumf %63, %66 : vector<16x27xf32>
    %c17 = arith.constant 17 : index
    %c0_52 = arith.constant 0 : index
    %c0_53 = arith.constant 0 : index
    %68 = vector.load %arg1[%c17, %c0_52, %c0_53] : memref<36x16x225xbf16, #tpu.memory_space<vmem>>, vector<1x16x225xbf16>
    %69 = vector.shape_cast %68 : vector<1x16x225xbf16> to vector<16x225xbf16>
    %cst_54 = arith.constant dense<0.000000e+00> : vector<16x27xf32>
    %70 = tpu.matmul %69, %0, %cst_54 {dimension_numbers = #tpu.dot_dimension_numbers<[1], [0], [0], [1], [0, 0, 1, 1], [], []>} : vector<16x225xbf16>, vector<225x27xbf16>, vector<16x27xf32> -> vector<16x27xf32>
    %71 = arith.maximumf %67, %70 : vector<16x27xf32>
    %c18 = arith.constant 18 : index
    %c0_55 = arith.constant 0 : index
    %c0_56 = arith.constant 0 : index
    %72 = vector.load %arg1[%c18, %c0_55, %c0_56] : memref<36x16x225xbf16, #tpu.memory_space<vmem>>, vector<1x16x225xbf16>
    %73 = vector.shape_cast %72 : vector<1x16x225xbf16> to vector<16x225xbf16>
    %cst_57 = arith.constant dense<0.000000e+00> : vector<16x27xf32>
    %74 = tpu.matmul %73, %0, %cst_57 {dimension_numbers = #tpu.dot_dimension_numbers<[1], [0], [0], [1], [0, 0, 1, 1], [], []>} : vector<16x225xbf16>, vector<225x27xbf16>, vector<16x27xf32> -> vector<16x27xf32>
    %75 = arith.maximumf %71, %74 : vector<16x27xf32>
    %c19 = arith.constant 19 : index
    %c0_58 = arith.constant 0 : index
    %c0_59 = arith.constant 0 : index
    %76 = vector.load %arg1[%c19, %c0_58, %c0_59] : memref<36x16x225xbf16, #tpu.memory_space<vmem>>, vector<1x16x225xbf16>
    %77 = vector.shape_cast %76 : vector<1x16x225xbf16> to vector<16x225xbf16>
    %cst_60 = arith.constant dense<0.000000e+00> : vector<16x27xf32>
    %78 = tpu.matmul %77, %0, %cst_60 {dimension_numbers = #tpu.dot_dimension_numbers<[1], [0], [0], [1], [0, 0, 1, 1], [], []>} : vector<16x225xbf16>, vector<225x27xbf16>, vector<16x27xf32> -> vector<16x27xf32>
    %79 = arith.maximumf %75, %78 : vector<16x27xf32>
    %c20 = arith.constant 20 : index
    %c0_61 = arith.constant 0 : index
    %c0_62 = arith.constant 0 : index
    %80 = vector.load %arg1[%c20, %c0_61, %c0_62] : memref<36x16x225xbf16, #tpu.memory_space<vmem>>, vector<1x16x225xbf16>
    %81 = vector.shape_cast %80 : vector<1x16x225xbf16> to vector<16x225xbf16>
    %cst_63 = arith.constant dense<0.000000e+00> : vector<16x27xf32>
    %82 = tpu.matmul %81, %0, %cst_63 {dimension_numbers = #tpu.dot_dimension_numbers<[1], [0], [0], [1], [0, 0, 1, 1], [], []>} : vector<16x225xbf16>, vector<225x27xbf16>, vector<16x27xf32> -> vector<16x27xf32>
    %83 = arith.maximumf %79, %82 : vector<16x27xf32>
    %c21 = arith.constant 21 : index
    %c0_64 = arith.constant 0 : index
    %c0_65 = arith.constant 0 : index
    %84 = vector.load %arg1[%c21, %c0_64, %c0_65] : memref<36x16x225xbf16, #tpu.memory_space<vmem>>, vector<1x16x225xbf16>
    %85 = vector.shape_cast %84 : vector<1x16x225xbf16> to vector<16x225xbf16>
    %cst_66 = arith.constant dense<0.000000e+00> : vector<16x27xf32>
    %86 = tpu.matmul %85, %0, %cst_66 {dimension_numbers = #tpu.dot_dimension_numbers<[1], [0], [0], [1], [0, 0, 1, 1], [], []>} : vector<16x225xbf16>, vector<225x27xbf16>, vector<16x27xf32> -> vector<16x27xf32>
    %87 = arith.maximumf %83, %86 : vector<16x27xf32>
    %c22 = arith.constant 22 : index
    %c0_67 = arith.constant 0 : index
    %c0_68 = arith.constant 0 : index
    %88 = vector.load %arg1[%c22, %c0_67, %c0_68] : memref<36x16x225xbf16, #tpu.memory_space<vmem>>, vector<1x16x225xbf16>
    %89 = vector.shape_cast %88 : vector<1x16x225xbf16> to vector<16x225xbf16>
    %cst_69 = arith.constant dense<0.000000e+00> : vector<16x27xf32>
    %90 = tpu.matmul %89, %0, %cst_69 {dimension_numbers = #tpu.dot_dimension_numbers<[1], [0], [0], [1], [0, 0, 1, 1], [], []>} : vector<16x225xbf16>, vector<225x27xbf16>, vector<16x27xf32> -> vector<16x27xf32>
    %91 = arith.maximumf %87, %90 : vector<16x27xf32>
    %c23 = arith.constant 23 : index
    %c0_70 = arith.constant 0 : index
    %c0_71 = arith.constant 0 : index
    %92 = vector.load %arg1[%c23, %c0_70, %c0_71] : memref<36x16x225xbf16, #tpu.memory_space<vmem>>, vector<1x16x225xbf16>
    %93 = vector.shape_cast %92 : vector<1x16x225xbf16> to vector<16x225xbf16>
    %cst_72 = arith.constant dense<0.000000e+00> : vector<16x27xf32>
    %94 = tpu.matmul %93, %0, %cst_72 {dimension_numbers = #tpu.dot_dimension_numbers<[1], [0], [0], [1], [0, 0, 1, 1], [], []>} : vector<16x225xbf16>, vector<225x27xbf16>, vector<16x27xf32> -> vector<16x27xf32>
    %95 = arith.maximumf %91, %94 : vector<16x27xf32>
    %c24 = arith.constant 24 : index
    %c0_73 = arith.constant 0 : index
    %c0_74 = arith.constant 0 : index
    %96 = vector.load %arg1[%c24, %c0_73, %c0_74] : memref<36x16x225xbf16, #tpu.memory_space<vmem>>, vector<1x16x225xbf16>
    %97 = vector.shape_cast %96 : vector<1x16x225xbf16> to vector<16x225xbf16>
    %cst_75 = arith.constant dense<0.000000e+00> : vector<16x27xf32>
    %98 = tpu.matmul %97, %0, %cst_75 {dimension_numbers = #tpu.dot_dimension_numbers<[1], [0], [0], [1], [0, 0, 1, 1], [], []>} : vector<16x225xbf16>, vector<225x27xbf16>, vector<16x27xf32> -> vector<16x27xf32>
    %99 = arith.maximumf %95, %98 : vector<16x27xf32>
    %c25 = arith.constant 25 : index
    %c0_76 = arith.constant 0 : index
    %c0_77 = arith.constant 0 : index
    %100 = vector.load %arg1[%c25, %c0_76, %c0_77] : memref<36x16x225xbf16, #tpu.memory_space<vmem>>, vector<1x16x225xbf16>
    %101 = vector.shape_cast %100 : vector<1x16x225xbf16> to vector<16x225xbf16>
    %cst_78 = arith.constant dense<0.000000e+00> : vector<16x27xf32>
    %102 = tpu.matmul %101, %0, %cst_78 {dimension_numbers = #tpu.dot_dimension_numbers<[1], [0], [0], [1], [0, 0, 1, 1], [], []>} : vector<16x225xbf16>, vector<225x27xbf16>, vector<16x27xf32> -> vector<16x27xf32>
    %103 = arith.maximumf %99, %102 : vector<16x27xf32>
    %c26 = arith.constant 26 : index
    %c0_79 = arith.constant 0 : index
    %c0_80 = arith.constant 0 : index
    %104 = vector.load %arg1[%c26, %c0_79, %c0_80] : memref<36x16x225xbf16, #tpu.memory_space<vmem>>, vector<1x16x225xbf16>
    %105 = vector.shape_cast %104 : vector<1x16x225xbf16> to vector<16x225xbf16>
    %cst_81 = arith.constant dense<0.000000e+00> : vector<16x27xf32>
    %106 = tpu.matmul %105, %0, %cst_81 {dimension_numbers = #tpu.dot_dimension_numbers<[1], [0], [0], [1], [0, 0, 1, 1], [], []>} : vector<16x225xbf16>, vector<225x27xbf16>, vector<16x27xf32> -> vector<16x27xf32>
    %107 = arith.maximumf %103, %106 : vector<16x27xf32>
    %c27 = arith.constant 27 : index
    %c0_82 = arith.constant 0 : index
    %c0_83 = arith.constant 0 : index
    %108 = vector.load %arg1[%c27, %c0_82, %c0_83] : memref<36x16x225xbf16, #tpu.memory_space<vmem>>, vector<1x16x225xbf16>
    %109 = vector.shape_cast %108 : vector<1x16x225xbf16> to vector<16x225xbf16>
    %cst_84 = arith.constant dense<0.000000e+00> : vector<16x27xf32>
    %110 = tpu.matmul %109, %0, %cst_84 {dimension_numbers = #tpu.dot_dimension_numbers<[1], [0], [0], [1], [0, 0, 1, 1], [], []>} : vector<16x225xbf16>, vector<225x27xbf16>, vector<16x27xf32> -> vector<16x27xf32>
    %111 = arith.maximumf %107, %110 : vector<16x27xf32>
    %c28 = arith.constant 28 : index
    %c0_85 = arith.constant 0 : index
    %c0_86 = arith.constant 0 : index
    %112 = vector.load %arg1[%c28, %c0_85, %c0_86] : memref<36x16x225xbf16, #tpu.memory_space<vmem>>, vector<1x16x225xbf16>
    %113 = vector.shape_cast %112 : vector<1x16x225xbf16> to vector<16x225xbf16>
    %cst_87 = arith.constant dense<0.000000e+00> : vector<16x27xf32>
    %114 = tpu.matmul %113, %0, %cst_87 {dimension_numbers = #tpu.dot_dimension_numbers<[1], [0], [0], [1], [0, 0, 1, 1], [], []>} : vector<16x225xbf16>, vector<225x27xbf16>, vector<16x27xf32> -> vector<16x27xf32>
    %115 = arith.maximumf %111, %114 : vector<16x27xf32>
    %c29 = arith.constant 29 : index
    %c0_88 = arith.constant 0 : index
    %c0_89 = arith.constant 0 : index
    %116 = vector.load %arg1[%c29, %c0_88, %c0_89] : memref<36x16x225xbf16, #tpu.memory_space<vmem>>, vector<1x16x225xbf16>
    %117 = vector.shape_cast %116 : vector<1x16x225xbf16> to vector<16x225xbf16>
    %cst_90 = arith.constant dense<0.000000e+00> : vector<16x27xf32>
    %118 = tpu.matmul %117, %0, %cst_90 {dimension_numbers = #tpu.dot_dimension_numbers<[1], [0], [0], [1], [0, 0, 1, 1], [], []>} : vector<16x225xbf16>, vector<225x27xbf16>, vector<16x27xf32> -> vector<16x27xf32>
    %119 = arith.maximumf %115, %118 : vector<16x27xf32>
    %c30 = arith.constant 30 : index
    %c0_91 = arith.constant 0 : index
    %c0_92 = arith.constant 0 : index
    %120 = vector.load %arg1[%c30, %c0_91, %c0_92] : memref<36x16x225xbf16, #tpu.memory_space<vmem>>, vector<1x16x225xbf16>
    %121 = vector.shape_cast %120 : vector<1x16x225xbf16> to vector<16x225xbf16>
    %cst_93 = arith.constant dense<0.000000e+00> : vector<16x27xf32>
    %122 = tpu.matmul %121, %0, %cst_93 {dimension_numbers = #tpu.dot_dimension_numbers<[1], [0], [0], [1], [0, 0, 1, 1], [], []>} : vector<16x225xbf16>, vector<225x27xbf16>, vector<16x27xf32> -> vector<16x27xf32>
    %123 = arith.maximumf %119, %122 : vector<16x27xf32>
    %c31 = arith.constant 31 : index
    %c0_94 = arith.constant 0 : index
    %c0_95 = arith.constant 0 : index
    %124 = vector.load %arg1[%c31, %c0_94, %c0_95] : memref<36x16x225xbf16, #tpu.memory_space<vmem>>, vector<1x16x225xbf16>
    %125 = vector.shape_cast %124 : vector<1x16x225xbf16> to vector<16x225xbf16>
    %cst_96 = arith.constant dense<0.000000e+00> : vector<16x27xf32>
    %126 = tpu.matmul %125, %0, %cst_96 {dimension_numbers = #tpu.dot_dimension_numbers<[1], [0], [0], [1], [0, 0, 1, 1], [], []>} : vector<16x225xbf16>, vector<225x27xbf16>, vector<16x27xf32> -> vector<16x27xf32>
    %127 = arith.maximumf %123, %126 : vector<16x27xf32>
    %c32 = arith.constant 32 : index
    %c0_97 = arith.constant 0 : index
    %c0_98 = arith.constant 0 : index
    %128 = vector.load %arg1[%c32, %c0_97, %c0_98] : memref<36x16x225xbf16, #tpu.memory_space<vmem>>, vector<1x16x225xbf16>
    %129 = vector.shape_cast %128 : vector<1x16x225xbf16> to vector<16x225xbf16>
    %cst_99 = arith.constant dense<0.000000e+00> : vector<16x27xf32>
    %130 = tpu.matmul %129, %0, %cst_99 {dimension_numbers = #tpu.dot_dimension_numbers<[1], [0], [0], [1], [0, 0, 1, 1], [], []>} : vector<16x225xbf16>, vector<225x27xbf16>, vector<16x27xf32> -> vector<16x27xf32>
    %131 = arith.maximumf %127, %130 : vector<16x27xf32>
    %c33 = arith.constant 33 : index
    %c0_100 = arith.constant 0 : index
    %c0_101 = arith.constant 0 : index
    %132 = vector.load %arg1[%c33, %c0_100, %c0_101] : memref<36x16x225xbf16, #tpu.memory_space<vmem>>, vector<1x16x225xbf16>
    %133 = vector.shape_cast %132 : vector<1x16x225xbf16> to vector<16x225xbf16>
    %cst_102 = arith.constant dense<0.000000e+00> : vector<16x27xf32>
    %134 = tpu.matmul %133, %0, %cst_102 {dimension_numbers = #tpu.dot_dimension_numbers<[1], [0], [0], [1], [0, 0, 1, 1], [], []>} : vector<16x225xbf16>, vector<225x27xbf16>, vector<16x27xf32> -> vector<16x27xf32>
    %135 = arith.maximumf %131, %134 : vector<16x27xf32>
    %c34 = arith.constant 34 : index
    %c0_103 = arith.constant 0 : index
    %c0_104 = arith.constant 0 : index
    %136 = vector.load %arg1[%c34, %c0_103, %c0_104] : memref<36x16x225xbf16, #tpu.memory_space<vmem>>, vector<1x16x225xbf16>
    %137 = vector.shape_cast %136 : vector<1x16x225xbf16> to vector<16x225xbf16>
    %cst_105 = arith.constant dense<0.000000e+00> : vector<16x27xf32>
    %138 = tpu.matmul %137, %0, %cst_105 {dimension_numbers = #tpu.dot_dimension_numbers<[1], [0], [0], [1], [0, 0, 1, 1], [], []>} : vector<16x225xbf16>, vector<225x27xbf16>, vector<16x27xf32> -> vector<16x27xf32>
    %139 = arith.maximumf %135, %138 : vector<16x27xf32>
    %c35 = arith.constant 35 : index
    %c0_106 = arith.constant 0 : index
    %c0_107 = arith.constant 0 : index
    %140 = vector.load %arg1[%c35, %c0_106, %c0_107] : memref<36x16x225xbf16, #tpu.memory_space<vmem>>, vector<1x16x225xbf16>
    %141 = vector.shape_cast %140 : vector<1x16x225xbf16> to vector<16x225xbf16>
    %cst_108 = arith.constant dense<0.000000e+00> : vector<16x27xf32>
    %142 = tpu.matmul %141, %0, %cst_108 {dimension_numbers = #tpu.dot_dimension_numbers<[1], [0], [0], [1], [0, 0, 1, 1], [], []>} : vector<16x225xbf16>, vector<225x27xbf16>, vector<16x27xf32> -> vector<16x27xf32>
    %143 = arith.maximumf %139, %142 : vector<16x27xf32>
    %c0_109 = arith.constant 0 : index
    %c0_110 = arith.constant 0 : index
    %144 = vector.load %arg3[%c0_109, %c0_110] : memref<1x27xf32, #tpu.memory_space<vmem>>, vector<1x27xf32>
    %145 = vector.broadcast %144 : vector<1x27xf32> to vector<16x27xf32>
    %146 = arith.addf %143, %145 : vector<16x27xf32>
    %cst_111 = arith.constant 0.000000e+00 : f32
    %147 = vector.broadcast %cst_111 : f32 to vector<16x27xf32>
    %148 = arith.maximumf %146, %147 : vector<16x27xf32>
    %149 = arith.truncf %148 : vector<16x27xf32> to vector<16x27xbf16>
    %c0_112 = arith.constant 0 : index
    %c0_113 = arith.constant 0 : index
    %150 = vector.load %arg4[%c0_112, %c0_113] : memref<27x84xbf16, #tpu.memory_space<vmem>>, vector<27x84xbf16>
    %cst_114 = arith.constant dense<0.000000e+00> : vector<16x84xf32>
    %151 = tpu.matmul %149, %150, %cst_114 {dimension_numbers = #tpu.dot_dimension_numbers<[1], [0], [0], [1], [0, 0, 1, 1], [], []>} : vector<16x27xbf16>, vector<27x84xbf16>, vector<16x84xf32> -> vector<16x84xf32>
    %c0_115 = arith.constant 0 : index
    %c0_116 = arith.constant 0 : index
    %152 = vector.load %arg5[%c0_115, %c0_116] : memref<1x84xf32, #tpu.memory_space<vmem>>, vector<1x84xf32>
    %153 = vector.broadcast %152 : vector<1x84xf32> to vector<16x84xf32>
    %154 = arith.addf %151, %153 : vector<16x84xf32>
    %cst_117 = arith.constant 0.000000e+00 : f32
    %155 = vector.broadcast %cst_117 : f32 to vector<16x84xf32>
    %156 = arith.maximumf %154, %155 : vector<16x84xf32>
    %157 = arith.truncf %156 : vector<16x84xf32> to vector<16x84xbf16>
    %c0_118 = arith.constant 0 : index
    %c0_119 = arith.constant 0 : index
    %158 = vector.load %arg6[%c0_118, %c0_119] : memref<84x128xbf16, #tpu.memory_space<vmem>>, vector<84x128xbf16>
    %cst_120 = arith.constant dense<0.000000e+00> : vector<16x128xf32>
    %159 = tpu.matmul %157, %158, %cst_120 {dimension_numbers = #tpu.dot_dimension_numbers<[1], [0], [0], [1], [0, 0, 1, 1], [], []>} : vector<16x84xbf16>, vector<84x128xbf16>, vector<16x128xf32> -> vector<16x128xf32>
    %c0_121 = arith.constant 0 : index
    %c0_122 = arith.constant 0 : index
    %160 = vector.load %arg7[%c0_121, %c0_122] : memref<1x128xf32, #tpu.memory_space<vmem>>, vector<1x128xf32>
    %161 = vector.broadcast %160 : vector<1x128xf32> to vector<16x128xf32>
    %162 = arith.addf %159, %161 : vector<16x128xf32>
    %c0_123 = arith.constant 0 : index
    %c0_124 = arith.constant 0 : index
    %163 = vector.load %arg8[%c0_123, %c0_124] : memref<16x128xf32, #tpu.memory_space<vmem>>, vector<16x128xf32>
    tpu.vector_store %arg8[%c0_123, %c0_124], %162 {strides = array<i32>} : memref<16x128xf32, #tpu.memory_space<vmem>>, vector<16x128xf32>,
    return
  }
  func.func @transform_0(%arg0: i32) -> (i32, i32, i32) {
    %c0_i32 = arith.constant 0 : i32
    %c0_i32_0 = arith.constant 0 : i32
    %c0_i32_1 = arith.constant 0 : i32
    return %c0_i32, %arg0, %c0_i32_0 : i32, i32, i32
  }
  func.func @transform_1(%arg0: i32) -> (i32, i32) {
    %c0_i32 = arith.constant 0 : i32
    %c0_i32_0 = arith.constant 0 : i32
    %c0_i32_1 = arith.constant 0 : i32
    return %c0_i32, %c0_i32_0 : i32, i32
  }
  func.func @transform_2(%arg0: i32) -> (i32, i32) {
    %c0_i32 = arith.constant 0 : i32
    %c0_i32_0 = arith.constant 0 : i32
    %c0_i32_1 = arith.constant 0 : i32
    return %c0_i32, %c0_i32_0 : i32, i32
  }
  func.func @transform_3(%arg0: i32) -> (i32, i32) {
    %c0_i32 = arith.constant 0 : i32
    %c0_i32_0 = arith.constant 0 : i32
    %c0_i32_1 = arith.constant 0 : i32
    return %c0_i32, %c0_i32_0 : i32, i32
  }
  func.func @transform_4(%arg0: i32) -> (i32, i32) {
    %c0_i32 = arith.constant 0 : i32
    %c0_i32_0 = arith.constant 0 : i32
    %c0_i32_1 = arith.constant 0 : i32
    return %c0_i32, %c0_i32_0 : i32, i32
  }
  func.func @transform_5(%arg0: i32) -> (i32, i32) {
    %c0_i32 = arith.constant 0 : i32
    %c0_i32_0 = arith.constant 0 : i32
    %c0_i32_1 = arith.constant 0 : i32
    return %c0_i32, %c0_i32_0 : i32, i32
  }
  func.func @transform_6(%arg0: i32) -> (i32, i32) {
    %c0_i32 = arith.constant 0 : i32
    %c0_i32_0 = arith.constant 0 : i32
    %c0_i32_1 = arith.constant 0 : i32
    return %c0_i32, %c0_i32_0 : i32, i32
  }
  func.func @transform_7(%arg0: i32) -> (i32, i32) {
    %c0_i32 = arith.constant 0 : i32
    %c0_i32_0 = arith.constant 0 : i32
    return %arg0, %c0_i32 : i32, i32
  }
}

</mosaic_0001>

<bundles_post_ra>
// kernel: cxr8net_forward.1
= control target key start
LH: loop header
LB: loop body
LE: loop exit
PB: predicated region body
PF: predicated region fallthrough
CT: control target
= control target key end

     0   :  { %vm158_vm0 = vcmask 1040384   ;;  %v2491_v4 = vmov 0   ;;  %vm154_vm1 = vcmask 793600   ;;  %vm1799_vm2 = vcmask 1044480   ;;  %s3887_s1 = inlined_call_operand.vmem [shape: bf16[225,27], index: 1, kind: input, shape index: {}]   ;;  %s3888_s0 = inlined_call_operand.vmem [shape: bf16[36,16,225], index: 0, kind: input, shape index: {}]   ;;  %s3889_s2 = inlined_call_operand.vmem [shape: f32[1,27], index: 2, kind: input, shape index: {}]   ;;  %s3890_s4 = inlined_call_operand.vmem [shape: f32[1,84], index: 4, kind: input, shape index: {}]   ;;  %s3891_s3 = inlined_call_operand.vmem [shape: bf16[27,84], index: 3, kind: input, shape index: {}]   ;;  %s3892_s5 = inlined_call_operand.vmem [shape: bf16[84,128], index: 5, kind: input, shape index: {}]   ;;  %s3893_s6 = inlined_call_operand.vmem [shape: f32[1,128], index: 6, kind: input, shape index: {}]   ;;  %s3894_s7 = inlined_call_operand.vmem [shape: f32[16,128], index: 7, kind: output, shape index: {}]  }
   0x1   :  { %v2536_v0 = vld [vmem:[%s3887_s1 + $0x38] sm:$0xff]  ;;  %v55_v1 = vld [vmem:[%s3887_s1 + $0x70] sm:$0x1]  ;;  %v160_v5 = vsel %vm158_vm0, 65535, %v2491_v4  ;;  %v2555_v8 = vld [vmem:[%s3887_s1 + $0x28] sm:$0xff]  ;;  %vm1800_vm3 = vcmask 1045504  }
   0x2   :  { %v124_v2 = vunpack.c.l.b16 %v55_v1  ;;  %164 = vmatpush.bf16.msra.mxu0 %v2536_v0  ;;  %207 = vmatpush.bf16.msra.mxu2 %v2536_v0  ;;  %v2546_v3 = vld [vmem:[%s3887_s1 + $0x30] sm:$0xff]  ;;  %v2562_v9 = vld [vmem:[%s3887_s1 + $0x68] sm:$0xff]  ;;  %v2569_v10 = vld [vmem:[%s3887_s1 + $0x20] sm:$0xff]  ;;  %vm1875_vm4 = vcmask 1041408   ;;  %vm1795_vm5 = vcmask 220160   ;;  %vm1871_vm6 = vcmask 687104  }
   0x3   :  { %v2576_v11 = vld [vmem:[%s3887_s1 + $0x60] sm:$0xff]  ;;  %v2583_v12 = vld [vmem:[%s3887_s1 + $0x18] sm:$0xff]  ;;  %v2597_v14 = vld [vmem:[%s3887_s1 + $0x10] sm:$0xff] }
   0x4   :  { %v139_v6 = vpack.c.b16 %v124_v2, %v124_v2  ;;  %v2590_v13 = vld [vmem:[%s3887_s1 + $0x58] sm:$0xff]  ;;  %v2604_v15 = vld [vmem:[%s3887_s1 + $0x50] sm:$0xff]  ;;  %v2611_v16 = vld [vmem:[%s3887_s1 + $0x8] sm:$0xff] }
   0x5   :  { %v2618_v17 = vld [vmem:[%s3887_s1 + $0x48] sm:$0xff]  ;;  %v2623_v18 = vld [vmem:[%s3887_s1] sm:$0xff]  ;;  %v2395_v20 = vld [vmem:[%s3888_s0 + $0x14] sm:$0xf] }
   0x6   :  { %v2548_v7 = vand.u32 %v160_v5, %v139_v6  ;;  %165 = vmatpush.bf16.msra.mxu0 %v2546_v3  ;;  %208 = vmatpush.bf16.msra.mxu2 %v2546_v3  ;;  %v2630_v19 = vld [vmem:[%s3887_s1 + $0x40] sm:$0xff]  ;;  %v1970_v21 = vld [vmem:[%s3888_s0 + $0x18] sm:$0xf0]  ;;  %v1968_v22 = vld [vmem:[%s3888_s0 + $0x10] sm:$0xf] }
   0x7   :  { %v2396_v23 = vld [vmem:[%s3888_s0 + $0x14] sm:$0xf0]  ;;  %v2393_v24 = vld [vmem:[%s3888_s0 + $0x4] sm:$0xf]  ;;  %v1903_v25 = vld [vmem:[%s3888_s0 + $0x8] sm:$0xf0]  ;;  %v1973_v28 = vor.u32 %v2395_v20, %v1970_v21 }
   0x8   :  { %179 = vmatpush.bf16.msra.mxu1 %v2548_v7  ;;  %222 = vmatpush.bf16.msra.mxu3 %v2548_v7  ;;  %v1901_v26 = vld [vmem:[%s3888_s0] sm:$0xf]  ;;  %v2394_v27 = vld [vmem:[%s3888_s0 + $0x4] sm:$0xf0]  ;;  %v1969_v29 = vor.u32 %v2396_v23, %v1968_v22  ;;  %v1906_v30 = vor.u32 %v2393_v24, %v1903_v25  ;;  %v2397_v32 = vld [vmem:[%s3888_s0 + $0x24] sm:$0xf] }
   0x9   :  { %v1902_v31 = vor.u32 %v2394_v27, %v1901_v26  ;;  %v1981_v33 = vld [vmem:[%s3888_s0 + $0x28] sm:$0xf0]  ;;  %v2399_v34 = vld [vmem:[%s3888_s0 + $0x34] sm:$0xf]  ;;  %v1992_v35 = vld [vmem:[%s3888_s0 + $0x38] sm:$0xf0] }
   0xa   :  { %166 = vmatpush.bf16.msra.mxu0 %v2555_v8  ;;  %209 = vmatpush.bf16.msra.mxu2 %v2555_v8  ;;  %v1984_v36 = vor.u32 %v2397_v32, %v1981_v33  ;;  %v1995_v37 = vor.u32 %v2399_v34, %v1992_v35  ;;  %v1979_v38 = vld [vmem:[%s3888_s0 + $0x20] sm:$0xf]  ;;  %v2398_v39 = vld [vmem:[%s3888_s0 + $0x24] sm:$0xf0]  ;;  %v1990_v40 = vld [vmem:[%s3888_s0 + $0x30] sm:$0xf] }
   0xb   :  { %v2400_v41 = vld [vmem:[%s3888_s0 + $0x34] sm:$0xf0]  ;;  %v1980_v42 = vor.u32 %v2398_v39, %v1979_v38  ;;  %v2001_v44 = vld [vmem:[%s3888_s0 + $0x40] sm:$0xf]  ;;  %v2402_v45 = vld [vmem:[%s3888_s0 + $0x44] sm:$0xf0] }
   0xc   :  { %180 = vmatpush.bf16.msra.mxu1 %v2562_v9  ;;  %223 = vmatpush.bf16.msra.mxu3 %v2562_v9  ;;  %v1991_v43 = vor.u32 %v2400_v41, %v1990_v40  ;;  %v2012_v46 = vld [vmem:[%s3888_s0 + $0x50] sm:$0xf]  ;;  %v2404_v47 = vld [vmem:[%s3888_s0 + $0x54] sm:$0xf0]  ;;  %v2401_v48 = vld [vmem:[%s3888_s0 + $0x44] sm:$0xf]  ;;  %v2002_v52 = vor.u32 %v2402_v45, %v2001_v44 }
   0xd   :  { %v2003_v49 = vld [vmem:[%s3888_s0 + $0x48] sm:$0xf0]  ;;  %v2403_v50 = vld [vmem:[%s3888_s0 + $0x54] sm:$0xf]  ;;  %v2014_v51 = vld [vmem:[%s3888_s0 + $0x58] sm:$0xf0]  ;;  %v2013_v53 = vor.u32 %v2404_v47, %v2012_v46 }
   0xe   :  { %167 = vmatpush.bf16.msra.mxu0 %v2569_v10  ;;  %210 = vmatpush.bf16.msra.mxu2 %v2569_v10  ;;  %v2006_v54 = vor.u32 %v2401_v48, %v2003_v49  ;;  %v2017_v55 = vor.u32 %v2403_v50, %v2014_v51  ;;  %v2405_v56 = vld [vmem:[%s3888_s0 + $0x64] sm:$0xf]  ;;  %v2025_v57 = vld [vmem:[%s3888_s0 + $0x68] sm:$0xf0]  ;;  %v2407_v58 = vld [vmem:[%s3888_s0 + $0x74] sm:$0xf] }
   0xf   :  { %v2036_v59 = vld [vmem:[%s3888_s0 + $0x78] sm:$0xf0]  ;;  %v2028_v60 = vor.u32 %v2405_v56, %v2025_v57  ;;  %v2023_v61 = vld [vmem:[%s3888_s0 + $0x60] sm:$0xf]  ;;  %v2406_v63 = vld [vmem:[%s3888_s0 + $0x64] sm:$0xf0] }
  0x10   :  { %181 = vmatpush.bf16.msra.mxu1 %v2576_v11  ;;  %224 = vmatpush.bf16.msra.mxu3 %v2576_v11  ;;  %v2039_v62 = vor.u32 %v2407_v58, %v2036_v59  ;;  %v2034_v1 = vld [vmem:[%s3888_s0 + $0x70] sm:$0xf]  ;;  %v2408_v2 = vld [vmem:[%s3888_s0 + $0x74] sm:$0xf0]  ;;  %v2024_v4 = vor.u32 %v2406_v63, %v2023_v61  ;;  %v2045_v6 = vld [vmem:[%s3888_s0 + $0x80] sm:$0xf] }
  0x11   :  { %v2035_v5 = vor.u32 %v2408_v2, %v2034_v1  ;;  %v2410_v20 = vld [vmem:[%s3888_s0 + $0x84] sm:$0xf0]  ;;  %v2056_v21 = vld [vmem:[%s3888_s0 + $0x90] sm:$0xf]  ;;  %v2412_v22 = vld [vmem:[%s3888_s0 + $0x94] sm:$0xf0] }
  0x12   :  { %168 = vmatpush.bf16.msra.mxu0 %v2583_v12  ;;  %211 = vmatpush.bf16.msra.mxu2 %v2583_v12  ;;  %v2409_v23 = vld [vmem:[%s3888_s0 + $0x84] sm:$0xf]  ;;  %v2047_v24 = vld [vmem:[%s3888_s0 + $0x88] sm:$0xf0]  ;;  %v2411_v25 = vld [vmem:[%s3888_s0 + $0x94] sm:$0xf]  ;;  %v2046_v27 = vor.u32 %v2410_v20, %v2045_v6 }
  0x13   :  { %v2058_v26 = vld [vmem:[%s3888_s0 + $0x98] sm:$0xf0]  ;;  %v2413_v34 = vld [vmem:[%s3888_s0 + $0xa4] sm:$0xf]  ;;  %v2069_v35 = vld [vmem:[%s3888_s0 + $0xa8] sm:$0xf0] }
  0x14   :  { %182 = vmatpush.bf16.msra.mxu1 %v2590_v13  ;;  %225 = vmatpush.bf16.msra.mxu3 %v2590_v13  ;;  %v2072_v40 = vor.u32 %v2413_v34, %v2069_v35  ;;  %v2414_v44 = vld [vmem:[%s3888_s0 + $0xa4] sm:$0xf0]  ;;  %v2078_v45 = vld [vmem:[%s3888_s0 + $0xb0] sm:$0xf]  ;;  %v2416_v46 = vld [vmem:[%s3888_s0 + $0xb4] sm:$0xf0] }
  0x15   :  { %v2079_v49 = vor.u32 %v2416_v46, %v2078_v45  ;;  %v2089_v61 = vld [vmem:[%s3888_s0 + $0xc0] sm:$0xf]  ;;  %v2100_v63 = vld [vmem:[%s3888_s0 + $0xd0] sm:$0xf]  ;;  %v2420_v1 = vld [vmem:[%s3888_s0 + $0xd4] sm:$0xf0] }
  0x16   :  { %169 = vmatpush.bf16.msra.mxu0 %v2597_v14  ;;  %212 = vmatpush.bf16.msra.mxu2 %v2597_v14  ;;  %v2417_v2 = vld [vmem:[%s3888_s0 + $0xc4] sm:$0xf]  ;;  %v2419_v6 = vld [vmem:[%s3888_s0 + $0xd4] sm:$0xf]  ;;  %v2102_v20 = vld [vmem:[%s3888_s0 + $0xd8] sm:$0xf0] }
  0x17   :  { %v2423_v34 = vld [vmem:[%s3888_s0 + $0xf4] sm:$0xf]  ;;  %v2124_v35 = vld [vmem:[%s3888_s0 + $0xf8] sm:$0xf0]  ;;  %v2424_v45 = vld [vmem:[%s3888_s0 + $0xf4] sm:$0xf0] }
  0x18   :  { %183 = vmatpush.bf16.msra.mxu1 %v2604_v15  ;;  %226 = vmatpush.bf16.msra.mxu3 %v2604_v15 }
  0x1a   :  { %170 = vmatpush.bf16.msra.mxu0 %v2611_v16  ;;  %213 = vmatpush.bf16.msra.mxu2 %v2611_v16 }
  0x1c   :  { %184 = vmatpush.bf16.msra.mxu1 %v2618_v17  ;;  %227 = vmatpush.bf16.msra.mxu3 %v2618_v17 }
  0x1e   :  { %171 = vmatpush.bf16.msra.mxu0 %v2623_v18  ;;  %214 = vmatpush.bf16.msra.mxu2 %v2623_v18 }
  0x20   :  { %185 = vmatpush.bf16.msra.mxu1 %v2630_v19  ;;  %228 = vmatpush.bf16.msra.mxu3 %v2630_v19 }
  0x21   :  { %215 = vmatmul.bf16.vlgmr.msra.gmra.mxu2 %v1969_v29  ;;  %172 = vmatmul.bf16.vlgmr.msra.gmra.mxu0 %v1902_v31  ;;  %v2050_v29 = vor.u32 %v2409_v23, %v2047_v24  ;;  %v2105_v24 = vor.u32 %v2419_v6, %v2102_v20  ;;  %v2425_v6 = vld [vmem:[%s3888_s0 + $0x104] sm:$0xf]  ;;  %v2135_v20 = vld [vmem:[%s3888_s0 + $0x108] sm:$0xf0] }
  0x22   :  { %297 = vmatpush.bf16.msrb.mxu0 %v2536_v0  ;;  %312 = vmatpush.bf16.msrb.mxu2 %v2548_v7 }
  0x23   :  { %1974 = vmatmul.msk.bf16.vlgmr.msra.gmra.mxu3 %vm154_vm1, %v1973_v28  ;;  %1963 = vmatmul.msk.bf16.vlgmr.msra.gmra.mxu1 %vm154_vm1, %v1906_v30  ;;  %v2057_v28 = vor.u32 %v2412_v22, %v2056_v21  ;;  %v2061_v30 = vor.u32 %v2411_v25, %v2058_v26  ;;  %v2101_v22 = vor.u32 %v2420_v1, %v2100_v63  ;;  %v2133_v63 = vld [vmem:[%s3888_s0 + $0x100] sm:$0xf]  ;;  %v2426_v1 = vld [vmem:[%s3888_s0 + $0x104] sm:$0xf0] }
  0x24   :  { %252 = vmatpush.bf16.msrb.mxu1 %v2536_v0  ;;  %267 = vmatpush.bf16.msrb.mxu3 %v2548_v7 }
  0x26   :  { %298 = vmatpush.bf16.msrb.mxu0 %v2546_v3  ;;  %313 = vmatpush.bf16.msrb.mxu2 %v2562_v9 }
  0x28   :  { %253 = vmatpush.bf16.msrb.mxu1 %v2546_v3  ;;  %268 = vmatpush.bf16.msrb.mxu3 %v2562_v9 }
  0x2a   :  { %299 = vmatpush.bf16.msrb.mxu0 %v2555_v8  ;;  %314 = vmatpush.bf16.msrb.mxu2 %v2576_v11 }
  0x2c   :  { %254 = vmatpush.bf16.msrb.mxu1 %v2555_v8  ;;  %269 = vmatpush.bf16.msrb.mxu3 %v2576_v11 }
  0x2e   :  { %300 = vmatpush.bf16.msrb.mxu0 %v2569_v10  ;;  %315 = vmatpush.bf16.msrb.mxu2 %v2590_v13 }
  0x30   :  { %255 = vmatpush.bf16.msrb.mxu1 %v2569_v10  ;;  %270 = vmatpush.bf16.msrb.mxu3 %v2590_v13 }
  0x32   :  { %301 = vmatpush.bf16.msrb.mxu0 %v2583_v12  ;;  %316 = vmatpush.bf16.msrb.mxu2 %v2604_v15 }
  0x34   :  { %256 = vmatpush.bf16.msrb.mxu1 %v2583_v12  ;;  %271 = vmatpush.bf16.msrb.mxu3 %v2604_v15 }
  0x36   :  { %302 = vmatpush.bf16.msrb.mxu0 %v2597_v14  ;;  %317 = vmatpush.bf16.msrb.mxu2 %v2618_v17 }
  0x38   :  { %257 = vmatpush.bf16.msrb.mxu1 %v2597_v14  ;;  %272 = vmatpush.bf16.msrb.mxu3 %v2618_v17 }
  0x3a   :  { %303 = vmatpush.bf16.msrb.mxu0 %v2611_v16  ;;  %318 = vmatpush.bf16.msrb.mxu2 %v2630_v19 }
  0x3c   :  { %258 = vmatpush.bf16.msrb.mxu1 %v2611_v16  ;;  %273 = vmatpush.bf16.msrb.mxu3 %v2630_v19 }
  0x3d   :  { %1996 = vmatmul.msk.bf16.vlgmr.msrb.gmra.mxu2 %vm154_vm1, %v1995_v37  ;;  %v2080_v37 = vld [vmem:[%s3888_s0 + $0xb8] sm:$0xf0] }
  0x3e   :  { %387 = vmatpush.bf16.msra.mxu2 %v2536_v0  ;;  %304 = vmatpush.bf16.msrb.mxu0 %v2623_v18 }
  0x3f   :  { %1985 = vmatmul.msk.bf16.vlgmr.msrb.gmra.mxu3 %vm154_vm1, %v1984_v36  ;;  %v2415_v36 = vld [vmem:[%s3888_s0 + $0xb4] sm:$0xf] }
  0x40   :  { %342 = vmatpush.bf16.msra.mxu3 %v2536_v0  ;;  %259 = vmatpush.bf16.msrb.mxu1 %v2623_v18 }
  0x41   :  { %305 = vmatmul.bf16.vlgmr.msrb.gmra.mxu0 %v1991_v43  ;;  %v2067_v43 = vld [vmem:[%s3888_s0 + $0xa0] sm:$0xf] }
  0x42   :  { %388 = vmatpush.bf16.msra.mxu2 %v2546_v3  ;;  %402 = vmatpush.bf16.msra.mxu0 %v2548_v7  ;;  %v2068_v48 = vor.u32 %v2414_v44, %v2067_v43  ;;  %v2422_v43 = vld [vmem:[%s3888_s0 + $0xe4] sm:$0xf0]  ;;  %v2122_v44 = vld [vmem:[%s3888_s0 + $0xf0] sm:$0xf] }
  0x43   :  { %260 = vmatmul.bf16.vlgmr.msrb.gmra.mxu1 %v1980_v42  ;;  %v2083_v42 = vor.u32 %v2415_v36, %v2080_v37 }
  0x44   :  { %357 = vmatpush.bf16.msra.mxu1 %v2548_v7  ;;  %343 = vmatpush.bf16.msra.mxu3 %v2546_v3 }
  0x46   :  { %389 = vmatpush.bf16.msra.mxu2 %v2555_v8  ;;  %403 = vmatpush.bf16.msra.mxu0 %v2562_v9 }
  0x48   :  { %358 = vmatpush.bf16.msra.mxu1 %v2562_v9  ;;  %344 = vmatpush.bf16.msra.mxu3 %v2555_v8 }
  0x4a   :  { %390 = vmatpush.bf16.msra.mxu2 %v2569_v10  ;;  %404 = vmatpush.bf16.msra.mxu0 %v2576_v11 }
  0x4c   :  { %359 = vmatpush.bf16.msra.mxu1 %v2576_v11  ;;  %345 = vmatpush.bf16.msra.mxu3 %v2569_v10 }
  0x4e   :  { %391 = vmatpush.bf16.msra.mxu2 %v2583_v12  ;;  %405 = vmatpush.bf16.msra.mxu0 %v2590_v13 }
  0x50   :  { %360 = vmatpush.bf16.msra.mxu1 %v2590_v13  ;;  %346 = vmatpush.bf16.msra.mxu3 %v2583_v12 }
  0x52   :  { %392 = vmatpush.bf16.msra.mxu2 %v2597_v14  ;;  %406 = vmatpush.bf16.msra.mxu0 %v2604_v15 }
  0x54   :  { %361 = vmatpush.bf16.msra.mxu1 %v2604_v15  ;;  %347 = vmatpush.bf16.msra.mxu3 %v2597_v14 }
  0x56   :  { %393 = vmatpush.bf16.msra.mxu2 %v2611_v16  ;;  %407 = vmatpush.bf16.msra.mxu0 %v2618_v17 }
  0x58   :  { %362 = vmatpush.bf16.msra.mxu1 %v2618_v17  ;;  %348 = vmatpush.bf16.msra.mxu3 %v2611_v16 }
  0x5a   :  { %394 = vmatpush.bf16.msra.mxu2 %v2623_v18  ;;  %408 = vmatpush.bf16.msra.mxu0 %v2630_v19 }
  0x5c   :  { %363 = vmatpush.bf16.msra.mxu1 %v2630_v19  ;;  %349 = vmatpush.bf16.msra.mxu3 %v2623_v18 }
  0x5d   :  { %395 = vmatmul.bf16.vlgmr.msra.gmra.mxu2 %v2013_v53  ;;  %2018 = vmatmul.msk.bf16.vlgmr.msra.gmra.mxu0 %vm154_vm1, %v2017_v55 }
  0x5e   :  { %477 = vmatpush.bf16.msrb.mxu0 %v2536_v0  ;;  %492 = vmatpush.bf16.msrb.mxu2 %v2548_v7 }
  0x5f   :  { %350 = vmatmul.bf16.vlgmr.msra.gmra.mxu3 %v2002_v52  ;;  %2007 = vmatmul.msk.bf16.vlgmr.msra.gmra.mxu1 %vm154_vm1, %v2006_v54 }
  0x60   :  { %432 = vmatpush.bf16.msrb.mxu1 %v2536_v0  ;;  %447 = vmatpush.bf16.msrb.mxu3 %v2548_v7 }
  0x62   :  { %478 = vmatpush.bf16.msrb.mxu0 %v2546_v3  ;;  %493 = vmatpush.bf16.msrb.mxu2 %v2562_v9 }
  0x64   :  { %433 = vmatpush.bf16.msrb.mxu1 %v2546_v3  ;;  %448 = vmatpush.bf16.msrb.mxu3 %v2562_v9 }
  0x66   :  { %479 = vmatpush.bf16.msrb.mxu0 %v2555_v8  ;;  %494 = vmatpush.bf16.msrb.mxu2 %v2576_v11 }
  0x68   :  { %434 = vmatpush.bf16.msrb.mxu1 %v2555_v8  ;;  %449 = vmatpush.bf16.msrb.mxu3 %v2576_v11 }
  0x6a   :  { %480 = vmatpush.bf16.msrb.mxu0 %v2569_v10  ;;  %495 = vmatpush.bf16.msrb.mxu2 %v2590_v13 }
  0x6c   :  { %435 = vmatpush.bf16.msrb.mxu1 %v2569_v10  ;;  %450 = vmatpush.bf16.msrb.mxu3 %v2590_v13 }
  0x6e   :  { %481 = vmatpush.bf16.msrb.mxu0 %v2583_v12  ;;  %496 = vmatpush.bf16.msrb.mxu2 %v2604_v15 }
  0x70   :  { %436 = vmatpush.bf16.msrb.mxu1 %v2583_v12  ;;  %451 = vmatpush.bf16.msrb.mxu3 %v2604_v15 }
  0x72   :  { %482 = vmatpush.bf16.msrb.mxu0 %v2597_v14  ;;  %497 = vmatpush.bf16.msrb.mxu2 %v2618_v17 }
  0x74   :  { %437 = vmatpush.bf16.msrb.mxu1 %v2597_v14  ;;  %452 = vmatpush.bf16.msrb.mxu3 %v2618_v17 }
  0x76   :  { %483 = vmatpush.bf16.msrb.mxu0 %v2611_v16  ;;  %498 = vmatpush.bf16.msrb.mxu2 %v2630_v19 }
  0x78   :  { %438 = vmatpush.bf16.msrb.mxu1 %v2611_v16  ;;  %453 = vmatpush.bf16.msrb.mxu3 %v2630_v19 }
  0x79   :  { %2040 = vmatmul.msk.bf16.vlgmr.msrb.gmra.mxu2 %vm154_vm1, %v2039_v62  ;;  %v2418_v62 = vld [vmem:[%s3888_s0 + $0xc4] sm:$0xf0] }
  0x7a   :  { %567 = vmatpush.bf16.msra.mxu2 %v2536_v0  ;;  %484 = vmatpush.bf16.msrb.mxu0 %v2623_v18  ;;  %v2090_v21 = vor.u32 %v2418_v62, %v2089_v61 }
  0x7b   :  { %2029 = vmatmul.msk.bf16.vlgmr.msrb.gmra.mxu3 %vm154_vm1, %v2028_v60 }
  0x7c   :  { %522 = vmatpush.bf16.msra.mxu3 %v2536_v0  ;;  %439 = vmatpush.bf16.msrb.mxu1 %v2623_v18 }
  0x7d   :  { %485 = vmatmul.bf16.vlgmr.msrb.gmra.mxu0 %v2035_v5 }
  0x7e   :  { %568 = vmatpush.bf16.msra.mxu2 %v2546_v3  ;;  %582 = vmatpush.bf16.msra.mxu0 %v2548_v7 }
  0x7f   :  { %440 = vmatmul.bf16.vlgmr.msrb.gmra.mxu1 %v2024_v4  ;;  %v2091_v4 = vld [vmem:[%s3888_s0 + $0xc8] sm:$0xf0] }
  0x80   :  { %523 = vmatpush.bf16.msra.mxu3 %v2546_v3  ;;  %537 = vmatpush.bf16.msra.mxu1 %v2548_v7  ;;  %v2094_v23 = vor.u32 %v2417_v2, %v2091_v4  ;;  %v2144_v4 = vld [vmem:[%s3888_s0 + $0x110] sm:$0xf] }
  0x82   :  { %569 = vmatpush.bf16.msra.mxu2 %v2555_v8  ;;  %583 = vmatpush.bf16.msra.mxu0 %v2562_v9 }
  0x84   :  { %524 = vmatpush.bf16.msra.mxu3 %v2555_v8  ;;  %538 = vmatpush.bf16.msra.mxu1 %v2562_v9 }
  0x86   :  { %570 = vmatpush.bf16.msra.mxu2 %v2569_v10  ;;  %584 = vmatpush.bf16.msra.mxu0 %v2576_v11 }
  0x88   :  { %525 = vmatpush.bf16.msra.mxu3 %v2569_v10  ;;  %539 = vmatpush.bf16.msra.mxu1 %v2576_v11 }
  0x8a   :  { %571 = vmatpush.bf16.msra.mxu2 %v2583_v12  ;;  %585 = vmatpush.bf16.msra.mxu0 %v2590_v13 }
  0x8c   :  { %526 = vmatpush.bf16.msra.mxu3 %v2583_v12  ;;  %540 = vmatpush.bf16.msra.mxu1 %v2590_v13 }
  0x8e   :  { %572 = vmatpush.bf16.msra.mxu2 %v2597_v14  ;;  %586 = vmatpush.bf16.msra.mxu0 %v2604_v15 }
  0x90   :  { %527 = vmatpush.bf16.msra.mxu3 %v2597_v14  ;;  %541 = vmatpush.bf16.msra.mxu1 %v2604_v15 }
  0x92   :  { %573 = vmatpush.bf16.msra.mxu2 %v2611_v16  ;;  %587 = vmatpush.bf16.msra.mxu0 %v2618_v17 }
  0x94   :  { %528 = vmatpush.bf16.msra.mxu3 %v2611_v16  ;;  %542 = vmatpush.bf16.msra.mxu1 %v2618_v17 }
  0x96   :  { %574 = vmatpush.bf16.msra.mxu2 %v2623_v18  ;;  %588 = vmatpush.bf16.msra.mxu0 %v2630_v19 }
  0x98   :  { %529 = vmatpush.bf16.msra.mxu3 %v2623_v18  ;;  %543 = vmatpush.bf16.msra.mxu1 %v2630_v19 }
  0x99   :  { %575 = vmatmul.bf16.vlgmr.msra.gmra.mxu2 %v2057_v28  ;;  %2062 = vmatmul.msk.bf16.vlgmr.msra.gmra.mxu0 %vm154_vm1, %v2061_v30 }
  0x9a   :  { %657 = vmatpush.bf16.msrb.mxu0 %v2536_v0  ;;  %672 = vmatpush.bf16.msrb.mxu2 %v2548_v7 }
  0x9b   :  { %530 = vmatmul.bf16.vlgmr.msra.gmra.mxu3 %v2046_v27  ;;  %2051 = vmatmul.msk.bf16.vlgmr.msra.gmra.mxu1 %vm154_vm1, %v2050_v29 }
  0x9c   :  { %612 = vmatpush.bf16.msrb.mxu1 %v2536_v0  ;;  %627 = vmatpush.bf16.msrb.mxu3 %v2548_v7 }
  0x9e   :  { %658 = vmatpush.bf16.msrb.mxu0 %v2546_v3  ;;  %673 = vmatpush.bf16.msrb.mxu2 %v2562_v9  ;;  %v173_v32 = vpop.f32.mrf.mxu0 }
  0xa0   :  { %613 = vmatpush.bf16.msrb.mxu1 %v2546_v3  ;;  %628 = vmatpush.bf16.msrb.mxu3 %v2562_v9  ;;  %v187_v31 = vpop.f32.mrf.mxu1 }
  0xa1   :  { %v2908_v33 = vadd.f32 %v187_v31, %v173_v32  ;;  %v2421_v31 = vld [vmem:[%s3888_s0 + $0xe4] sm:$0xf]  ;;  %v2113_v32 = vld [vmem:[%s3888_s0 + $0xe8] sm:$0xf0] }
  0xa2   :  { %659 = vmatpush.bf16.msrb.mxu0 %v2555_v8  ;;  %674 = vmatpush.bf16.msrb.mxu2 %v2576_v11 }
  0xa4   :  { %614 = vmatpush.bf16.msrb.mxu1 %v2555_v8  ;;  %629 = vmatpush.bf16.msrb.mxu3 %v2576_v11  ;;  %v216_v39 = vpop.f32.mrf.mxu2 }
  0xa6   :  { %660 = vmatpush.bf16.msrb.mxu0 %v2569_v10  ;;  %675 = vmatpush.bf16.msrb.mxu2 %v2590_v13  ;;  %v230_v38 = vpop.f32.mrf.mxu3  ;;  %v2959_v51 = vpop.f32.mrf.mxu0 }
  0xa7   :  { %v231_v41 = vadd.f32 %v230_v38, %v216_v39  ;;  %v2116_v39 = vor.u32 %v2421_v31, %v2113_v32 }
  0xa8   :  { %615 = vmatpush.bf16.msrb.mxu1 %v2569_v10  ;;  %630 = vmatpush.bf16.msrb.mxu3 %v2590_v13  ;;  %v2957_v50 = vpop.f32.mrf.mxu1 }
  0xa9   :  { %v235_v47 = vmax.f32 %v2908_v33, %v231_v41 }
  0xaa   :  { %661 = vmatpush.bf16.msrb.mxu0 %v2583_v12  ;;  %676 = vmatpush.bf16.msrb.mxu2 %v2604_v15 }
  0xac   :  { %616 = vmatpush.bf16.msrb.mxu1 %v2583_v12  ;;  %631 = vmatpush.bf16.msrb.mxu3 %v2604_v15  ;;  %v2966_v53 = vpop.f32.mrf.mxu2 }
  0xae   :  { %662 = vmatpush.bf16.msrb.mxu0 %v2597_v14  ;;  %677 = vmatpush.bf16.msrb.mxu2 %v2618_v17  ;;  %v2962_v52 = vpop.f32.mrf.mxu3 }
  0xb0   :  { %617 = vmatpush.bf16.msrb.mxu1 %v2597_v14  ;;  %632 = vmatpush.bf16.msrb.mxu3 %v2618_v17 }
  0xb2   :  { %663 = vmatpush.bf16.msrb.mxu0 %v2611_v16  ;;  %678 = vmatpush.bf16.msrb.mxu2 %v2630_v19 }
  0xb4   :  { %618 = vmatpush.bf16.msrb.mxu1 %v2611_v16  ;;  %633 = vmatpush.bf16.msrb.mxu3 %v2630_v19 }
  0xb5   :  { %2084 = vmatmul.msk.bf16.vlgmr.msrb.gmra.mxu2 %vm154_vm1, %v2083_v42  ;;  %v2127_v42 = vor.u32 %v2423_v34, %v2124_v35 }
  0xb6   :  { %747 = vmatpush.bf16.msra.mxu2 %v2536_v0  ;;  %664 = vmatpush.bf16.msrb.mxu0 %v2623_v18 }
  0xb7   :  { %2073 = vmatmul.msk.bf16.vlgmr.msrb.gmra.mxu3 %vm154_vm1, %v2072_v40  ;;  %v2111_v40 = vld [vmem:[%s3888_s0 + $0xe0] sm:$0xf] }
  0xb8   :  { %702 = vmatpush.bf16.msra.mxu3 %v2536_v0  ;;  %619 = vmatpush.bf16.msrb.mxu1 %v2623_v18 }
  0xb9   :  { %665 = vmatmul.bf16.vlgmr.msrb.gmra.mxu0 %v2079_v49 }
  0xba   :  { %748 = vmatpush.bf16.msra.mxu2 %v2546_v3  ;;  %762 = vmatpush.bf16.msra.mxu0 %v2548_v7 }
  0xbb   :  { %620 = vmatmul.bf16.vlgmr.msrb.gmra.mxu1 %v2068_v48  ;;  %v2123_v48 = vor.u32 %v2424_v45, %v2122_v44  ;;  %v3229_v44 = vld [vmem:[%s3887_s1 + $0x30] sm:$0xff]  ;;  %v3237_v45 = vld [vmem:[%s3887_s1 + $0x68] sm:$0xff] }
  0xbc   :  { %717 = vmatpush.bf16.msra.mxu1 %v2548_v7  ;;  %703 = vmatpush.bf16.msra.mxu3 %v2546_v3 }
  0xbe   :  { %749 = vmatpush.bf16.msra.mxu2 %v2555_v8  ;;  %763 = vmatpush.bf16.msra.mxu0 %v2562_v9  ;;  %v306_v55 = vpop.f32.mrf.mxu0 }
  0xc0   :  { %718 = vmatpush.bf16.msra.mxu1 %v2562_v9  ;;  %704 = vmatpush.bf16.msra.mxu3 %v2555_v8  ;;  %v261_v54 = vpop.f32.mrf.mxu1  ;;  %v320_v58 = vpop.f32.mrf.mxu2 }
  0xc1   :  { %v2978_v59 = vadd.f32 %v320_v58, %v306_v55 }
  0xc2   :  { %750 = vmatpush.bf16.msra.mxu2 %v2569_v10  ;;  %764 = vmatpush.bf16.msra.mxu0 %v2576_v11  ;;  %v275_v56 = vpop.f32.mrf.mxu3 }
  0xc3   :  { %v276_v57 = vadd.f32 %v275_v56, %v261_v54 }
  0xc4   :  { %719 = vmatpush.bf16.msra.mxu1 %v2576_v11  ;;  %705 = vmatpush.bf16.msra.mxu3 %v2569_v10 }
  0xc5   :  { %v2982_v60 = vmax.f32 %v235_v47, %v276_v57  ;;  %v2112_v47 = vor.u32 %v2422_v43, %v2111_v40  ;;  %v2166_v40 = vld [vmem:[%s3888_s0 + $0x130] sm:$0xf] }
  0xc6   :  { %751 = vmatpush.bf16.msra.mxu2 %v2583_v12  ;;  %765 = vmatpush.bf16.msra.mxu0 %v2590_v13  ;;  %v3032_v26 = vpop.f32.mrf.mxu0 }
  0xc7   :  { %v325_v5 = vmax.f32 %v2982_v60, %v2978_v59 }
  0xc8   :  { %720 = vmatpush.bf16.msra.mxu1 %v2590_v13  ;;  %706 = vmatpush.bf16.msra.mxu3 %v2583_v12  ;;  %v3029_v25 = vpop.f32.mrf.mxu1  ;;  %v3039_v28 = vpop.f32.mrf.mxu2 }
  0xca   :  { %752 = vmatpush.bf16.msra.mxu2 %v2597_v14  ;;  %766 = vmatpush.bf16.msra.mxu0 %v2604_v15  ;;  %v3036_v27 = vpop.f32.mrf.mxu3 }
  0xcc   :  { %721 = vmatpush.bf16.msra.mxu1 %v2604_v15  ;;  %707 = vmatpush.bf16.msra.mxu3 %v2597_v14 }
  0xce   :  { %753 = vmatpush.bf16.msra.mxu2 %v2611_v16  ;;  %767 = vmatpush.bf16.msra.mxu0 %v2618_v17 }
  0xd0   :  { %722 = vmatpush.bf16.msra.mxu1 %v2618_v17  ;;  %708 = vmatpush.bf16.msra.mxu3 %v2611_v16 }
  0xd2   :  { %754 = vmatpush.bf16.msra.mxu2 %v2623_v18  ;;  %768 = vmatpush.bf16.msra.mxu0 %v2630_v19 }
  0xd4   :  { %723 = vmatpush.bf16.msra.mxu1 %v2630_v19  ;;  %709 = vmatpush.bf16.msra.mxu3 %v2623_v18 }
  0xd5   :  { %755 = vmatmul.bf16.vlgmr.msra.gmra.mxu2 %v2101_v22  ;;  %2106 = vmatmul.msk.bf16.vlgmr.msra.gmra.mxu0 %vm154_vm1, %v2105_v24  ;;  %v2146_v22 = vld [vmem:[%s3888_s0 + $0x118] sm:$0xf0]  ;;  %v2134_v24 = vor.u32 %v2426_v1, %v2133_v63  ;;  %v3293_v1 = vld [vmem:[%s3887_s1 + $0x10] sm:$0xff] }
  0xd6   :  { %837 = vmatpush.bf16.msrb.mxu0 %v2536_v0  ;;  %852 = vmatpush.bf16.msrb.mxu2 %v2548_v7 }
  0xd7   :  { %710 = vmatmul.bf16.vlgmr.msra.gmra.mxu3 %v2090_v21  ;;  %2095 = vmatmul.msk.bf16.vlgmr.msra.gmra.mxu1 %vm154_vm1, %v2094_v23  ;;  %v2427_v21 = vld [vmem:[%s3888_s0 + $0x114] sm:$0xf] }
  0xd8   :  { %792 = vmatpush.bf16.msrb.mxu1 %v2536_v0  ;;  %807 = vmatpush.bf16.msrb.mxu3 %v2548_v7  ;;  %v2149_v31 = vor.u32 %v2427_v21, %v2146_v22  ;;  %v3309_v22 = vld [vmem:[%s3887_s1 + $0x8] sm:$0xff] }
  0xda   :  { %838 = vmatpush.bf16.msrb.mxu0 %v2546_v3  ;;  %853 = vmatpush.bf16.msrb.mxu2 %v2562_v9  ;;  %v410_v30 = vpop.f32.mrf.mxu0 }
  0xdc   :  { %793 = vmatpush.bf16.msrb.mxu1 %v2546_v3  ;;  %808 = vmatpush.bf16.msrb.mxu3 %v2562_v9  ;;  %v365_v29 = vpop.f32.mrf.mxu1 }
  0xde   :  { %839 = vmatpush.bf16.msrb.mxu0 %v2555_v8  ;;  %854 = vmatpush.bf16.msrb.mxu2 %v2576_v11 }
  0xe0   :  { %794 = vmatpush.bf16.msrb.mxu1 %v2555_v8  ;;  %809 = vmatpush.bf16.msrb.mxu3 %v2576_v11  ;;  %v396_v37 = vpop.f32.mrf.mxu2 }
  0xe1   :  { %v411_v38 = vadd.f32 %v410_v30, %v396_v37  ;;  %v2138_v30 = vor.u32 %v2425_v6, %v2135_v20  ;;  %v3301_v20 = vld [vmem:[%s3887_s1 + $0x48] sm:$0xff] }
  0xe2   :  { %840 = vmatpush.bf16.msrb.mxu0 %v2569_v10  ;;  %855 = vmatpush.bf16.msrb.mxu2 %v2590_v13  ;;  %v351_v33 = vpop.f32.mrf.mxu3  ;;  %v3095_v54 = vpop.f32.mrf.mxu0 }
  0xe3   :  { %v366_v36 = vadd.f32 %v365_v29, %v351_v33 }
  0xe4   :  { %795 = vmatpush.bf16.msrb.mxu1 %v2569_v10  ;;  %810 = vmatpush.bf16.msrb.mxu3 %v2590_v13  ;;  %v3091_v49 = vpop.f32.mrf.mxu1 }
  0xe5   :  { %v370_v41 = vmax.f32 %v325_v5, %v366_v36  ;;  %v2428_v5 = vld [vmem:[%s3888_s0 + $0x114] sm:$0xf0] }
  0xe6   :  { %841 = vmatpush.bf16.msrb.mxu0 %v2583_v12  ;;  %856 = vmatpush.bf16.msrb.mxu2 %v2604_v15  ;;  %v2145_v29 = vor.u32 %v2428_v5, %v2144_v4 }
  0xe7   :  { %v415_v46 = vmax.f32 %v370_v41, %v411_v38  ;;  %v2430_v38 = vld [vmem:[%s3888_s0 + $0x124] sm:$0xf0]  ;;  %v2432_v41 = vld [vmem:[%s3888_s0 + $0x134] sm:$0xf0] }
  0xe8   :  { %796 = vmatpush.bf16.msrb.mxu1 %v2583_v12  ;;  %811 = vmatpush.bf16.msrb.mxu3 %v2604_v15  ;;  %v3101_v56 = vpop.f32.mrf.mxu2  ;;  %v2167_v43 = vor.u32 %v2432_v41, %v2166_v40  ;;  %v190_v40 = vadd.f32 %v2957_v50, %v2959_v51  ;;  %v233_v41 = vadd.f32 %v2962_v52, %v2966_v53  ;;  %v2437_v50 = vld [vmem:[%s3888_s0 + $0x164] sm:$0xf]  ;;  %v2201_v51 = vld [vmem:[%s3888_s0 + $0x168] sm:$0xf0]  ;;  %v2439_v53 = vld [vmem:[%s3888_s0 + $0x174] sm:$0xf] }
  0xea   :  { %842 = vmatpush.bf16.msrb.mxu0 %v2597_v14  ;;  %857 = vmatpush.bf16.msrb.mxu2 %v2618_v17  ;;  %v3099_v55 = vpop.f32.mrf.mxu3 }
  0xec   :  { %797 = vmatpush.bf16.msrb.mxu1 %v2597_v14  ;;  %812 = vmatpush.bf16.msrb.mxu3 %v2618_v17 }
  0xee   :  { %843 = vmatpush.bf16.msrb.mxu0 %v2611_v16  ;;  %858 = vmatpush.bf16.msrb.mxu2 %v2630_v19 }
  0xf0   :  { %798 = vmatpush.bf16.msrb.mxu1 %v2611_v16  ;;  %813 = vmatpush.bf16.msrb.mxu3 %v2630_v19 }
  0xf1   :  { %2128 = vmatmul.msk.bf16.vlgmr.msrb.gmra.mxu2 %vm154_vm1, %v2127_v42  ;;  %v3216_v42 = vld [vmem:[%s3887_s1 + $0x38] sm:$0xff] }
  0xf2   :  { %927 = vmatpush.bf16.msra.mxu2 %v2536_v0  ;;  %844 = vmatpush.bf16.msrb.mxu0 %v2623_v18 }
  0xf3   :  { %2117 = vmatmul.msk.bf16.vlgmr.msrb.gmra.mxu3 %vm154_vm1, %v2116_v39 }
  0xf4   :  { %882 = vmatpush.bf16.msra.mxu3 %v2536_v0  ;;  %799 = vmatpush.bf16.msrb.mxu1 %v2623_v18 }
  0xf5   :  { %845 = vmatmul.bf16.vlgmr.msrb.gmra.mxu0 %v2123_v48 }
  0xf6   :  { %928 = vmatpush.bf16.msra.mxu2 %v2546_v3  ;;  %942 = vmatpush.bf16.msra.mxu0 %v2548_v7 }
  0xf7   :  { %800 = vmatmul.bf16.vlgmr.msrb.gmra.mxu1 %v2112_v47  ;;  %v3253_v47 = vld [vmem:[%s3887_s1 + $0x60] sm:$0xff] }
  0xf8   :  { %883 = vmatpush.bf16.msra.mxu3 %v2546_v3  ;;  %897 = vmatpush.bf16.msra.mxu1 %v2548_v7 }
  0xfa   :  { %929 = vmatpush.bf16.msra.mxu2 %v2555_v8  ;;  %943 = vmatpush.bf16.msra.mxu0 %v2562_v9  ;;  %v486_v58 = vpop.f32.mrf.mxu0 }
  0xfc   :  { %884 = vmatpush.bf16.msra.mxu3 %v2555_v8  ;;  %898 = vmatpush.bf16.msra.mxu1 %v2562_v9  ;;  %v441_v57 = vpop.f32.mrf.mxu1  ;;  %v500_v61 = vpop.f32.mrf.mxu2 }
  0xfd   :  { %v3113_v62 = vadd.f32 %v500_v61, %v486_v58  ;;  %v3279_v61 = vld [vmem:[%s3887_s1 + $0x18] sm:$0xff] }
  0xfe   :  { %930 = vmatpush.bf16.msra.mxu2 %v2569_v10  ;;  %944 = vmatpush.bf16.msra.mxu0 %v2576_v11  ;;  %v455_v59 = vpop.f32.mrf.mxu3 }
  0xff   :  { %v456_v60 = vadd.f32 %v455_v59, %v441_v57  ;;  %v3261_v57 = vld [vmem:[%s3887_s1 + $0x20] sm:$0xff] }
 0x100   :  { %885 = vmatpush.bf16.msra.mxu3 %v2569_v10  ;;  %899 = vmatpush.bf16.msra.mxu1 %v2576_v11 }
 0x101   :  { %v3123_v2 = vmax.f32 %v415_v46, %v456_v60  ;;  %v3273_v60 = vld [vmem:[%s3887_s1 + $0x58] sm:$0xff] }
 0x102   :  { %931 = vmatpush.bf16.msra.mxu2 %v2583_v12  ;;  %945 = vmatpush.bf16.msra.mxu0 %v2590_v13  ;;  %v3165_v32 = vpop.f32.mrf.mxu0 }
 0x103   :  { %v505_v23 = vmax.f32 %v3123_v2, %v3113_v62  ;;  %v3287_v62 = vld [vmem:[%s3887_s1 + $0x50] sm:$0xff] }
 0x104   :  { %886 = vmatpush.bf16.msra.mxu3 %v2583_v12  ;;  %900 = vmatpush.bf16.msra.mxu1 %v2590_v13 }
 0x106   :  { %932 = vmatpush.bf16.msra.mxu2 %v2597_v14  ;;  %946 = vmatpush.bf16.msra.mxu0 %v2604_v15 }
 0x108   :  { %887 = vmatpush.bf16.msra.mxu3 %v2597_v14  ;;  %901 = vmatpush.bf16.msra.mxu1 %v2604_v15 }
 0x10a   :  { %933 = vmatpush.bf16.msra.mxu2 %v2611_v16  ;;  %947 = vmatpush.bf16.msra.mxu0 %v2618_v17 }
 0x10c   :  { %888 = vmatpush.bf16.msra.mxu3 %v2611_v16  ;;  %902 = vmatpush.bf16.msra.mxu1 %v2618_v17 }
 0x10e   :  { %934 = vmatpush.bf16.msra.mxu2 %v2623_v18  ;;  %948 = vmatpush.bf16.msra.mxu0 %v2630_v19 }
 0x110   :  { %889 = vmatpush.bf16.msra.mxu3 %v2623_v18  ;;  %903 = vmatpush.bf16.msra.mxu1 %v2630_v19 }
 0x111   :  { %935 = vmatmul.bf16.vlgmr.msra.gmra.mxu2 %v2145_v29  ;;  %2150 = vmatmul.msk.bf16.vlgmr.msra.gmra.mxu0 %vm154_vm1, %v2149_v31  ;;  %v2434_v29 = vld [vmem:[%s3888_s0 + $0x144] sm:$0xf0]  ;;  %v2436_v31 = vld [vmem:[%s3888_s0 + $0x154] sm:$0xf0] }
 0x112   :  { %1017 = vmatpush.bf16.msrb.mxu0 %v2536_v0  ;;  %1032 = vmatpush.bf16.msrb.mxu2 %v2548_v7 }
 0x113   :  { %890 = vmatmul.bf16.vlgmr.msra.gmra.mxu3 %v2134_v24  ;;  %2139 = vmatmul.msk.bf16.vlgmr.msra.gmra.mxu1 %vm154_vm1, %v2138_v30  ;;  %v2177_v24 = vld [vmem:[%s3888_s0 + $0x140] sm:$0xf]  ;;  %v2188_v30 = vld [vmem:[%s3888_s0 + $0x150] sm:$0xf] }
 0x114   :  { %972 = vmatpush.bf16.msrb.mxu1 %v2536_v0  ;;  %987 = vmatpush.bf16.msrb.mxu3 %v2548_v7  ;;  %v3163_v0 = vpop.f32.mrf.mxu1 }
 0x116   :  { %1018 = vmatpush.bf16.msrb.mxu0 %v2546_v3  ;;  %1033 = vmatpush.bf16.msrb.mxu2 %v2562_v9 }
 0x118   :  { %973 = vmatpush.bf16.msrb.mxu1 %v2546_v3  ;;  %988 = vmatpush.bf16.msrb.mxu3 %v2562_v9  ;;  %v3171_v3 = vpop.f32.mrf.mxu3  ;;  %v3173_v9 = vpop.f32.mrf.mxu2 }
 0x11a   :  { %1019 = vmatpush.bf16.msrb.mxu0 %v2555_v8  ;;  %1034 = vmatpush.bf16.msrb.mxu2 %v2576_v11 }
 0x11c   :  { %974 = vmatpush.bf16.msrb.mxu1 %v2555_v8  ;;  %989 = vmatpush.bf16.msrb.mxu3 %v2576_v11  ;;  %v545_v8 = vpop.f32.mrf.mxu1  ;;  %v2429_v11 = vld [vmem:[%s3888_s0 + $0x124] sm:$0xf] }
 0x11e   :  { %1020 = vmatpush.bf16.msrb.mxu0 %v2569_v10  ;;  %1035 = vmatpush.bf16.msrb.mxu2 %v2590_v13 }
 0x120   :  { %975 = vmatpush.bf16.msrb.mxu1 %v2569_v10  ;;  %990 = vmatpush.bf16.msrb.mxu3 %v2590_v13  ;;  %v590_v10 = vpop.f32.mrf.mxu0  ;;  %v2157_v13 = vld [vmem:[%s3888_s0 + $0x128] sm:$0xf0]  ;;  %v531_v33 = vpop.f32.mrf.mxu3 }
 0x121   :  { %v576_v34 = vpop.f32.mrf.mxu2  ;;  %v546_v35 = vadd.f32 %v545_v8, %v531_v33  ;;  %v2160_v37 = vor.u32 %v2429_v11, %v2157_v13  ;;  %v2433_v8 = vld [vmem:[%s3888_s0 + $0x144] sm:$0xf]  ;;  %v2435_v13 = vld [vmem:[%s3888_s0 + $0x154] sm:$0xf]  ;;  %v2178_v33 = vor.u32 %v2434_v29, %v2177_v24  ;;  %v2204_v24 = vor.u32 %v2437_v50, %v2201_v51  ;;  %v2199_v29 = vld [vmem:[%s3888_s0 + $0x160] sm:$0xf] }
 0x122   :  { %1021 = vmatpush.bf16.msrb.mxu0 %v2583_v12  ;;  %1036 = vmatpush.bf16.msrb.mxu2 %v2604_v15  ;;  %v3195_v36 = vadd.f32 %v590_v10, %v576_v34  ;;  %v2179_v10 = vld [vmem:[%s3888_s0 + $0x148] sm:$0xf0]  ;;  %v3351_v34 = vld [vmem:[%s3887_s1] sm:$0xff] }
 0x123   :  { %v550_v39 = vmax.f32 %v505_v23, %v546_v35  ;;  %v2189_v35 = vor.u32 %v2436_v31, %v2188_v30  ;;  %v368_v30 = vadd.f32 %v3091_v49, %v3099_v55  ;;  %v2438_v31 = vld [vmem:[%s3888_s0 + $0x164] sm:$0xf0]  ;;  %v2440_v49 = vld [vmem:[%s3888_s0 + $0x174] sm:$0xf0]  ;;  %v2221_v51 = vld [vmem:[%s3888_s0 + $0x180] sm:$0xf] }
 0x124   :  { %976 = vmatpush.bf16.msrb.mxu1 %v2583_v12  ;;  %991 = vmatpush.bf16.msrb.mxu3 %v2604_v15  ;;  %v2431_v12 = vld [vmem:[%s3888_s0 + $0x134] sm:$0xf]  ;;  %v2168_v15 = vld [vmem:[%s3888_s0 + $0x138] sm:$0xf0]  ;;  %v3248_v46 = vpop.f32.mrf.mxu1 }
 0x126   :  { %1022 = vmatpush.bf16.msrb.mxu0 %v2597_v14  ;;  %1037 = vmatpush.bf16.msrb.mxu2 %v2618_v17 }
 0x128   :  { %977 = vmatpush.bf16.msrb.mxu1 %v2597_v14  ;;  %992 = vmatpush.bf16.msrb.mxu3 %v2618_v17  ;;  %v2171_v14 = vor.u32 %v2431_v12, %v2168_v15  ;;  %v2155_v17 = vld [vmem:[%s3888_s0 + $0x120] sm:$0xf]  ;;  %v3256_v48 = vpop.f32.mrf.mxu0  ;;  %v3265_v58 = vpop.f32.mrf.mxu3  ;;  %v2190_v12 = vld [vmem:[%s3888_s0 + $0x158] sm:$0xf0] }
 0x129   :  { %v3268_v59 = vpop.f32.mrf.mxu2  ;;  %v3345_v15 = vld [vmem:[%s3887_s1 + $0x40] sm:$0xff] }
 0x12a   :  { %1023 = vmatpush.bf16.msrb.mxu0 %v2611_v16  ;;  %1038 = vmatpush.bf16.msrb.mxu2 %v2630_v19 }
 0x12c   :  { %978 = vmatpush.bf16.msrb.mxu1 %v2611_v16  ;;  %993 = vmatpush.bf16.msrb.mxu3 %v2630_v19  ;;  %v595_v16 = vmax.f32 %v550_v39, %v3195_v36  ;;  %v2156_v19 = vor.u32 %v2430_v38, %v2155_v17  ;;  %v2182_v36 = vor.u32 %v2433_v8, %v2179_v10  ;;  %v2210_v8 = vld [vmem:[%s3888_s0 + $0x170] sm:$0xf] }
 0x12d   :  { %2172 = vmatmul.msk.bf16.vlgmr.msrb.gmra.mxu2 %vm154_vm1, %v2171_v14  ;;  %v2211_v10 = vor.u32 %v2440_v49, %v2210_v8 }
 0x12e   :  { %1107 = vmatpush.bf16.msra.mxu2 %v3216_v42  ;;  %1024 = vmatpush.bf16.msrb.mxu0 %v2623_v18 }
 0x12f   :  { %2161 = vmatmul.msk.bf16.vlgmr.msrb.gmra.mxu3 %vm154_vm1, %v2160_v37  ;;  %v2193_v37 = vor.u32 %v2435_v13, %v2190_v12  ;;  %v413_v13 = vadd.f32 %v3095_v54, %v3101_v56 }
 0x130   :  { %1062 = vmatpush.bf16.msra.mxu3 %v3216_v42  ;;  %979 = vmatpush.bf16.msrb.mxu1 %v2623_v18  ;;  %v3243_v18 = vld [vmem:[%s3887_s1 + $0x28] sm:$0xff] }
 0x131   :  { %1025 = vmatmul.bf16.vlgmr.msrb.gmra.mxu0 %v2167_v43 }
 0x132   :  { %1108 = vmatpush.bf16.msra.mxu2 %v3229_v44  ;;  %1122 = vmatpush.bf16.msra.mxu0 %v2548_v7 }
 0x133   :  { %980 = vmatmul.bf16.vlgmr.msrb.gmra.mxu1 %v2156_v19 }
 0x134   :  { %1077 = vmatpush.bf16.msra.mxu1 %v2548_v7  ;;  %1063 = vmatpush.bf16.msra.mxu3 %v3229_v44 }
 0x136   :  { %1109 = vmatpush.bf16.msra.mxu2 %v3243_v18  ;;  %1123 = vmatpush.bf16.msra.mxu0 %v3237_v45  ;;  %v666_v2 = vpop.f32.mrf.mxu0 }
 0x138   :  { %1078 = vmatpush.bf16.msra.mxu1 %v3237_v45  ;;  %1064 = vmatpush.bf16.msra.mxu3 %v3243_v18  ;;  %v621_v63 = vpop.f32.mrf.mxu1  ;;  %v680_v6 = vpop.f32.mrf.mxu2 }
 0x139   :  { %v3304_v21 = vadd.f32 %v680_v6, %v666_v2  ;;  %v323_v2 = vadd.f32 %v3039_v28, %v3032_v26 }
 0x13a   :  { %1110 = vmatpush.bf16.msra.mxu2 %v3261_v57  ;;  %1124 = vmatpush.bf16.msra.mxu0 %v3253_v47  ;;  %v635_v4 = vpop.f32.mrf.mxu3 }
 0x13b   :  { %v636_v5 = vadd.f32 %v635_v4, %v621_v63  ;;  %v236_v63 = vmax.f32 %v190_v40, %v233_v41 }
 0x13c   :  { %1079 = vmatpush.bf16.msra.mxu1 %v3253_v47  ;;  %1065 = vmatpush.bf16.msra.mxu3 %v3261_v57 }
 0x13d   :  { %v3313_v23 = vmax.f32 %v595_v16, %v636_v5  ;;  %v278_v16 = vadd.f32 %v3036_v27, %v3029_v25  ;;  %v2212_v25 = vld [vmem:[%s3888_s0 + $0x178] sm:$0xf0] }
 0x13e   :  { %1111 = vmatpush.bf16.msra.mxu2 %v3279_v61  ;;  %1125 = vmatpush.bf16.msra.mxu0 %v3273_v60  ;;  %v3370_v14 = vpop.f32.mrf.mxu0  ;;  %v2215_v28 = vor.u32 %v2439_v53, %v2212_v25  ;;  %v2232_v53 = vld [vmem:[%s3888_s0 + $0x190] sm:$0xf]  ;;  %v2444_v25 = vld [vmem:[%s3888_s0 + $0x194] sm:$0xf0] }
 0x13f   :  { %v685_v11 = vmax.f32 %v3313_v23, %v3304_v21  ;;  %v281_v27 = vmax.f32 %v236_v63, %v278_v16  ;;  %v2200_v23 = vor.u32 %v2438_v31, %v2199_v29 }
 0x140   :  { %1080 = vmatpush.bf16.msra.mxu1 %v3273_v60  ;;  %1066 = vmatpush.bf16.msra.mxu3 %v3279_v61  ;;  %v3372_v17 = vpop.f32.mrf.mxu1  ;;  %v3380_v39 = vpop.f32.mrf.mxu2 }
 0x141   :  { %v326_v55 = vmax.f32 %v281_v27, %v323_v2  ;;  %v2441_v27 = vld [vmem:[%s3888_s0 + $0x184] sm:$0xf]  ;;  %v2223_v2 = vld [vmem:[%s3888_s0 + $0x188] sm:$0xf0] }
 0x142   :  { %1112 = vmatpush.bf16.msra.mxu2 %v3293_v1  ;;  %1126 = vmatpush.bf16.msra.mxu0 %v3287_v62  ;;  %v3377_v38 = vpop.f32.mrf.mxu3  ;;  %v2226_v31 = vor.u32 %v2441_v27, %v2223_v2 }
 0x144   :  { %1081 = vmatpush.bf16.msra.mxu1 %v3287_v62  ;;  %1067 = vmatpush.bf16.msra.mxu3 %v3293_v1 }
 0x146   :  { %1113 = vmatpush.bf16.msra.mxu2 %v3309_v22  ;;  %1127 = vmatpush.bf16.msra.mxu0 %v3301_v20 }
 0x148   :  { %1082 = vmatpush.bf16.msra.mxu1 %v3301_v20  ;;  %1068 = vmatpush.bf16.msra.mxu3 %v3309_v22 }
 0x14a   :  { %1114 = vmatpush.bf16.msra.mxu2 %v3351_v34  ;;  %1128 = vmatpush.bf16.msra.mxu0 %v3345_v15 }
 0x14c   :  { %1083 = vmatpush.bf16.msra.mxu1 %v3345_v15  ;;  %1069 = vmatpush.bf16.msra.mxu3 %v3351_v34 }
 0x14d   :  { %1115 = vmatmul.bf16.vlgmr.msra.gmra.mxu2 %v2189_v35  ;;  %2194 = vmatmul.msk.bf16.vlgmr.msra.gmra.mxu0 %vm154_vm1, %v2193_v37  ;;  %v503_v37 = vadd.f32 %v3173_v9, %v3165_v32  ;;  %v593_v32 = vadd.f32 %v3256_v48, %v3268_v59  ;;  %v638_v9 = vadd.f32 %v3377_v38, %v3372_v17 }
 0x14e   :  { %1197 = vmatpush.bf16.msrb.mxu0 %v3216_v42  ;;  %1212 = vmatpush.bf16.msrb.mxu2 %v2548_v7  ;;  %v683_v48 = vadd.f32 %v3380_v39, %v3370_v14  ;;  %v2442_v14 = vld [vmem:[%s3888_s0 + $0x184] sm:$0xf0] }
 0x14f   :  { %1070 = vmatmul.bf16.vlgmr.msra.gmra.mxu3 %v2178_v33  ;;  %2183 = vmatmul.msk.bf16.vlgmr.msra.gmra.mxu1 %vm154_vm1, %v2182_v36  ;;  %v458_v33 = vadd.f32 %v3171_v3, %v3163_v0  ;;  %v548_v0 = vadd.f32 %v3248_v46, %v3265_v58  ;;  %v2222_v29 = vor.u32 %v2442_v14, %v2221_v51 }
 0x150   :  { %1152 = vmatpush.bf16.msrb.mxu1 %v3216_v42  ;;  %1167 = vmatpush.bf16.msrb.mxu3 %v2548_v7 }
 0x152   :  { %1198 = vmatpush.bf16.msrb.mxu0 %v3229_v44  ;;  %1213 = vmatpush.bf16.msrb.mxu2 %v3237_v45  ;;  %v770_v19 = vpop.f32.mrf.mxu0 }
 0x154   :  { %1153 = vmatpush.bf16.msrb.mxu1 %v3229_v44  ;;  %1168 = vmatpush.bf16.msrb.mxu3 %v3237_v45  ;;  %v725_v43 = vpop.f32.mrf.mxu1 }
 0x156   :  { %1199 = vmatpush.bf16.msrb.mxu0 %v3243_v18  ;;  %1214 = vmatpush.bf16.msrb.mxu2 %v3253_v47 }
 0x158   :  { %1154 = vmatpush.bf16.msrb.mxu1 %v3243_v18  ;;  %1169 = vmatpush.bf16.msrb.mxu3 %v3253_v47  ;;  %v756_v5 = vpop.f32.mrf.mxu2 }
 0x159   :  { %v3411_v6 = vadd.f32 %v770_v19, %v756_v5  ;;  %v2234_v5 = vld [vmem:[%s3888_s0 + $0x198] sm:$0xf0] }
 0x15a   :  { %1200 = vmatpush.bf16.msrb.mxu0 %v3261_v57  ;;  %1215 = vmatpush.bf16.msrb.mxu2 %v3273_v60  ;;  %v711_v52 = vpop.f32.mrf.mxu3  ;;  %v772_v12 = vpop.f32.mrf.mxu0 }
 0x15b   :  { %v726_v4 = vadd.f32 %v725_v43, %v711_v52 }
 0x15c   :  { %1155 = vmatpush.bf16.msrb.mxu1 %v3261_v57  ;;  %1170 = vmatpush.bf16.msrb.mxu3 %v3273_v60  ;;  %v727_v3 = vpop.f32.mrf.mxu1 }
 0x15d   :  { %v3423_v26 = vmax.f32 %v685_v11, %v726_v4  ;;  %v371_v11 = vmax.f32 %v326_v55, %v368_v30  ;;  %v2443_v4 = vld [vmem:[%s3888_s0 + $0x194] sm:$0xf] }
 0x15e   :  { %1201 = vmatpush.bf16.msrb.mxu0 %v3279_v61  ;;  %1216 = vmatpush.bf16.msrb.mxu2 %v3287_v62  ;;  %v2237_v8 = vor.u32 %v2443_v4, %v2234_v5 }
 0x15f   :  { %v775_v21 = vmax.f32 %v3423_v26, %v3411_v6  ;;  %v416_v54 = vmax.f32 %v371_v11, %v413_v13  ;;  %v2233_v26 = vor.u32 %v2444_v25, %v2232_v53 }
 0x160   :  { %1156 = vmatpush.bf16.msrb.mxu1 %v3279_v61  ;;  %1171 = vmatpush.bf16.msrb.mxu3 %v3287_v62  ;;  %v758_v35 = vpop.f32.mrf.mxu2 }
 0x161   :  { %v3451_v36 = vadd.f32 %v772_v12, %v758_v35  ;;  %v461_v56 = vmax.f32 %v416_v54, %v458_v33  ;;  %v2445_v35 = vld [vmem:[%s3888_s0 + $0x1a4] sm:$0xf]  ;;  %v2447_v54 = vld [vmem:[%s3888_s0 + $0x1b4] sm:$0xf] }
 0x162   :  { %1202 = vmatpush.bf16.msrb.mxu0 %v3293_v1  ;;  %1217 = vmatpush.bf16.msrb.mxu2 %v3301_v20  ;;  %v713_v41 = vpop.f32.mrf.mxu3 }
 0x163   :  { %v506_v40 = vmax.f32 %v461_v56, %v503_v37  ;;  %v728_v17 = vadd.f32 %v727_v3, %v713_v41  ;;  %v2256_v56 = vld [vmem:[%s3888_s0 + $0x1b8] sm:$0xf0] }
 0x164   :  { %1157 = vmatpush.bf16.msrb.mxu1 %v3293_v1  ;;  %1172 = vmatpush.bf16.msrb.mxu3 %v3301_v20 }
 0x165   :  { %v551_v16 = vmax.f32 %v506_v40, %v548_v0 }
 0x166   :  { %1203 = vmatpush.bf16.msrb.mxu0 %v3309_v22  ;;  %1218 = vmatpush.bf16.msrb.mxu2 %v3345_v15 }
 0x167   :  { %v596_v46 = vmax.f32 %v551_v16, %v593_v32  ;;  %v2259_v16 = vor.u32 %v2447_v54, %v2256_v56  ;;  %v2243_v32 = vld [vmem:[%s3888_s0 + $0x1a0] sm:$0xf] }
 0x168   :  { %1158 = vmatpush.bf16.msrb.mxu1 %v3309_v22  ;;  %1173 = vmatpush.bf16.msrb.mxu3 %v3345_v15 }
 0x169   :  { %2216 = vmatmul.msk.bf16.vlgmr.msrb.gmra.mxu2 %vm154_vm1, %v2215_v28  ;;  %v641_v43 = vmax.f32 %v596_v46, %v638_v9  ;;  %v2446_v9 = vld [vmem:[%s3888_s0 + $0x1a4] sm:$0xf0] }
 0x16a   :  { %1287 = vmatpush.bf16.msra.mxu2 %v3216_v42  ;;  %1204 = vmatpush.bf16.msrb.mxu0 %v3351_v34 }
 0x16b   :  { %2205 = vmatmul.msk.bf16.vlgmr.msrb.gmra.mxu3 %vm154_vm1, %v2204_v24  ;;  %v686_v39 = vmax.f32 %v641_v43, %v683_v48  ;;  %v2244_v48 = vor.u32 %v2446_v9, %v2243_v32  ;;  %v2455_v32 = vld [vmem:[%s3888_s0 + $0x1f4] sm:$0xf]  ;;  %v2300_v9 = vld [vmem:[%s3888_s0 + $0x1f8] sm:$0xf0] }
 0x16c   :  { %1242 = vmatpush.bf16.msra.mxu3 %v3216_v42  ;;  %1159 = vmatpush.bf16.msrb.mxu1 %v3351_v34 }
 0x16d   :  { %1205 = vmatmul.bf16.vlgmr.msrb.gmra.mxu0 %v2211_v10  ;;  %v731_v6 = vmax.f32 %v686_v39, %v728_v17 }
 0x16e   :  { %1288 = vmatpush.bf16.msra.mxu2 %v3229_v44  ;;  %1302 = vmatpush.bf16.msra.mxu0 %v2548_v7 }
 0x16f   :  { %1160 = vmatmul.bf16.vlgmr.msrb.gmra.mxu1 %v2200_v23  ;;  %v776_v55 = vmax.f32 %v731_v6, %v3451_v36  ;;  %v2245_v36 = vld [vmem:[%s3888_s0 + $0x1a8] sm:$0xf0] }
 0x170   :  { %1243 = vmatpush.bf16.msra.mxu3 %v3229_v44  ;;  %1257 = vmatpush.bf16.msra.mxu1 %v2548_v7  ;;  %v2248_v41 = vor.u32 %v2445_v35, %v2245_v36 }
 0x172   :  { %1289 = vmatpush.bf16.msra.mxu2 %v3243_v18  ;;  %1303 = vmatpush.bf16.msra.mxu0 %v3237_v45  ;;  %v846_v19 = vpop.f32.mrf.mxu0 }
 0x174   :  { %1244 = vmatpush.bf16.msra.mxu3 %v3243_v18  ;;  %1258 = vmatpush.bf16.msra.mxu1 %v3237_v45  ;;  %v801_v58 = vpop.f32.mrf.mxu1  ;;  %v860_v63 = vpop.f32.mrf.mxu2 }
 0x175   :  { %v3481_v50 = vadd.f32 %v860_v63, %v846_v19  ;;  %v2448_v19 = vld [vmem:[%s3888_s0 + $0x1b4] sm:$0xf0] }
 0x176   :  { %1290 = vmatpush.bf16.msra.mxu2 %v3261_v57  ;;  %1304 = vmatpush.bf16.msra.mxu0 %v3253_v47  ;;  %v815_v59 = vpop.f32.mrf.mxu3 }
 0x177   :  { %v816_v38 = vadd.f32 %v815_v59, %v801_v58  ;;  %v2254_v58 = vld [vmem:[%s3888_s0 + $0x1b0] sm:$0xf] }
 0x178   :  { %1245 = vmatpush.bf16.msra.mxu3 %v3261_v57  ;;  %1259 = vmatpush.bf16.msra.mxu1 %v3253_v47 }
 0x179   :  { %v3491_v52 = vmax.f32 %v775_v21, %v816_v38  ;;  %v2255_v38 = vor.u32 %v2448_v19, %v2254_v58 }
 0x17a   :  { %1291 = vmatpush.bf16.msra.mxu2 %v3279_v61  ;;  %1305 = vmatpush.bf16.msra.mxu0 %v3273_v60  ;;  %v848_v28 = vpop.f32.mrf.mxu0 }
 0x17b   :  { %v865_v24 = vmax.f32 %v3491_v52, %v3481_v50 }
 0x17c   :  { %1246 = vmatpush.bf16.msra.mxu3 %v3279_v61  ;;  %1260 = vmatpush.bf16.msra.mxu1 %v3273_v60  ;;  %v803_v30 = vpop.f32.mrf.mxu1  ;;  %v862_v23 = vpop.f32.mrf.mxu2 }
 0x17d   :  { %v3522_v10 = vadd.f32 %v862_v23, %v848_v28  ;;  %v2449_v28 = vld [vmem:[%s3888_s0 + $0x1c4] sm:$0xf] }
 0x17e   :  { %1292 = vmatpush.bf16.msra.mxu2 %v3293_v1  ;;  %1306 = vmatpush.bf16.msra.mxu0 %v3287_v62  ;;  %v817_v49 = vpop.f32.mrf.mxu3 }
 0x17f   :  { %v818_v21 = vadd.f32 %v817_v49, %v803_v30  ;;  %v2276_v30 = vld [vmem:[%s3888_s0 + $0x1d0] sm:$0xf]  ;;  %v2451_v49 = vld [vmem:[%s3888_s0 + $0x1d4] sm:$0xf] }
 0x180   :  { %1247 = vmatpush.bf16.msra.mxu3 %v3293_v1  ;;  %1261 = vmatpush.bf16.msra.mxu1 %v3287_v62 }
 0x181   :  { %v3524_v11 = vmax.f32 %v776_v55, %v818_v21  ;;  %v2278_v55 = vld [vmem:[%s3888_s0 + $0x1d8] sm:$0xf0] }
 0x182   :  { %1293 = vmatpush.bf16.msra.mxu2 %v3309_v22  ;;  %1307 = vmatpush.bf16.msra.mxu0 %v3301_v20 }
 0x183   :  { %v866_v13 = vmax.f32 %v3524_v11, %v3522_v10 }
 0x184   :  { %1248 = vmatpush.bf16.msra.mxu3 %v3309_v22  ;;  %1262 = vmatpush.bf16.msra.mxu1 %v3301_v20 }
 0x186   :  { %1294 = vmatpush.bf16.msra.mxu2 %v3351_v34  ;;  %1308 = vmatpush.bf16.msra.mxu0 %v3345_v15 }
 0x188   :  { %1249 = vmatpush.bf16.msra.mxu3 %v3351_v34  ;;  %1263 = vmatpush.bf16.msra.mxu1 %v3345_v15 }
 0x189   :  { %1295 = vmatmul.bf16.vlgmr.msra.gmra.mxu2 %v2233_v26  ;;  %2238 = vmatmul.msk.bf16.vlgmr.msra.gmra.mxu0 %vm154_vm1, %v2237_v8  ;;  %v2452_v26 = vld [vmem:[%s3888_s0 + $0x1d4] sm:$0xf0] }
 0x18a   :  { %1377 = vmatpush.bf16.msrb.mxu0 %v3216_v42  ;;  %1392 = vmatpush.bf16.msrb.mxu2 %v2548_v7  ;;  %v2277_v10 = vor.u32 %v2452_v26, %v2276_v30 }
 0x18b   :  { %1250 = vmatmul.bf16.vlgmr.msra.gmra.mxu3 %v2222_v29  ;;  %2227 = vmatmul.msk.bf16.vlgmr.msra.gmra.mxu1 %vm154_vm1, %v2226_v31  ;;  %v2450_v29 = vld [vmem:[%s3888_s0 + $0x1c4] sm:$0xf0]  ;;  %v2267_v31 = vld [vmem:[%s3888_s0 + $0x1c8] sm:$0xf0] }
 0x18c   :  { %1332 = vmatpush.bf16.msrb.mxu1 %v3216_v42  ;;  %1347 = vmatpush.bf16.msrb.mxu3 %v2548_v7 }
 0x18e   :  { %1378 = vmatpush.bf16.msrb.mxu0 %v3229_v44  ;;  %1393 = vmatpush.bf16.msrb.mxu2 %v3237_v45  ;;  %v950_v33 = vpop.f32.mrf.mxu0 }
 0x190   :  { %1333 = vmatpush.bf16.msrb.mxu1 %v3229_v44  ;;  %1348 = vmatpush.bf16.msrb.mxu3 %v3237_v45  ;;  %v905_v12 = vpop.f32.mrf.mxu1 }
 0x192   :  { %1379 = vmatpush.bf16.msrb.mxu0 %v3243_v18  ;;  %1394 = vmatpush.bf16.msrb.mxu2 %v3253_v47 }
 0x194   :  { %1334 = vmatpush.bf16.msrb.mxu1 %v3243_v18  ;;  %1349 = vmatpush.bf16.msrb.mxu3 %v3253_v47  ;;  %v936_v0 = vpop.f32.mrf.mxu2 }
 0x195   :  { %v951_v40 = vadd.f32 %v950_v33, %v936_v0  ;;  %v2281_v33 = vor.u32 %v2451_v49, %v2278_v55  ;;  %v2458_v49 = vld [vmem:[%s3888_s0 + $0x204] sm:$0xf0] }
 0x196   :  { %1380 = vmatpush.bf16.msrb.mxu0 %v3261_v57  ;;  %1395 = vmatpush.bf16.msrb.mxu2 %v3273_v60  ;;  %v891_v37 = vpop.f32.mrf.mxu3  ;;  %v952_v17 = vpop.f32.mrf.mxu0 }
 0x197   :  { %v906_v3 = vadd.f32 %v905_v12, %v891_v37 }
 0x198   :  { %1335 = vmatpush.bf16.msrb.mxu1 %v3261_v57  ;;  %1350 = vmatpush.bf16.msrb.mxu3 %v3273_v60  ;;  %v907_v59 = vpop.f32.mrf.mxu1 }
 0x199   :  { %v910_v46 = vmax.f32 %v865_v24, %v906_v3  ;;  %v2265_v24 = vld [vmem:[%s3888_s0 + $0x1c0] sm:$0xf] }
 0x19a   :  { %1381 = vmatpush.bf16.msrb.mxu0 %v3279_v61  ;;  %1396 = vmatpush.bf16.msrb.mxu2 %v3287_v62  ;;  %v2266_v21 = vor.u32 %v2450_v29, %v2265_v24 }
 0x19b   :  { %v955_v43 = vmax.f32 %v910_v46, %v951_v40  ;;  %v2453_v40 = vld [vmem:[%s3888_s0 + $0x1e4] sm:$0xf] }
 0x19c   :  { %1336 = vmatpush.bf16.msrb.mxu1 %v3279_v61  ;;  %1351 = vmatpush.bf16.msrb.mxu3 %v3287_v62  ;;  %v938_v50 = vpop.f32.mrf.mxu2 }
 0x19d   :  { %v953_v14 = vadd.f32 %v952_v17, %v938_v50  ;;  %v2303_v17 = vor.u32 %v2455_v32, %v2300_v9  ;;  %v2456_v50 = vld [vmem:[%s3888_s0 + $0x1f4] sm:$0xf0] }
 0x19e   :  { %1382 = vmatpush.bf16.msrb.mxu0 %v3293_v1  ;;  %1397 = vmatpush.bf16.msrb.mxu2 %v3301_v20  ;;  %v893_v63 = vpop.f32.mrf.mxu3 }
 0x19f   :  { %v908_v51 = vadd.f32 %v907_v59, %v893_v63  ;;  %v2298_v63 = vld [vmem:[%s3888_s0 + $0x1f0] sm:$0xf] }
 0x1a0   :  { %1337 = vmatpush.bf16.msrb.mxu1 %v3293_v1  ;;  %1352 = vmatpush.bf16.msrb.mxu3 %v3301_v20 }
 0x1a1   :  { %v911_v39 = vmax.f32 %v866_v13, %v908_v51  ;;  %v2270_v13 = vor.u32 %v2449_v28, %v2267_v31 }
 0x1a2   :  { %1383 = vmatpush.bf16.msrb.mxu0 %v3309_v22  ;;  %1398 = vmatpush.bf16.msrb.mxu2 %v3345_v15 }
 0x1a3   :  { %v956_v52 = vmax.f32 %v911_v39, %v953_v14 }
 0x1a4   :  { %1338 = vmatpush.bf16.msrb.mxu1 %v3309_v22  ;;  %1353 = vmatpush.bf16.msrb.mxu3 %v3345_v15 }
 0x1a5   :  { %2260 = vmatmul.msk.bf16.vlgmr.msrb.gmra.mxu2 %vm154_vm1, %v2259_v16 }
 0x1a6   :  { %1467 = vmatpush.bf16.msra.mxu2 %v3216_v42  ;;  %1384 = vmatpush.bf16.msrb.mxu0 %v3351_v34 }
 0x1a7   :  { %2249 = vmatmul.msk.bf16.vlgmr.msrb.gmra.mxu3 %vm154_vm1, %v2248_v41  ;;  %v2289_v41 = vld [vmem:[%s3888_s0 + $0x1e8] sm:$0xf0] }
 0x1a8   :  { %1422 = vmatpush.bf16.msra.mxu3 %v3216_v42  ;;  %1339 = vmatpush.bf16.msrb.mxu1 %v3351_v34 }
 0x1a9   :  { %1385 = vmatmul.bf16.vlgmr.msrb.gmra.mxu0 %v2255_v38  ;;  %v2454_v38 = vld [vmem:[%s3888_s0 + $0x1e4] sm:$0xf0] }
 0x1aa   :  { %1468 = vmatpush.bf16.msra.mxu2 %v3229_v44  ;;  %1482 = vmatpush.bf16.msra.mxu0 %v2548_v7 }
 0x1ab   :  { %1340 = vmatmul.bf16.vlgmr.msrb.gmra.mxu1 %v2244_v48  ;;  %v2287_v48 = vld [vmem:[%s3888_s0 + $0x1e0] sm:$0xf] }
 0x1ac   :  { %1437 = vmatpush.bf16.msra.mxu1 %v2548_v7  ;;  %1423 = vmatpush.bf16.msra.mxu3 %v3229_v44  ;;  %v2288_v39 = vor.u32 %v2454_v38, %v2287_v48  ;;  %v2464_v48 = vld [vmem:[%s3888_s0 + $0x234] sm:$0xf0] }
 0x1ae   :  { %1469 = vmatpush.bf16.msra.mxu2 %v3243_v18  ;;  %1483 = vmatpush.bf16.msra.mxu0 %v3237_v45  ;;  %v1026_v25 = vpop.f32.mrf.mxu0 }
 0x1b0   :  { %1438 = vmatpush.bf16.msra.mxu1 %v3237_v45  ;;  %1424 = vmatpush.bf16.msra.mxu3 %v3243_v18  ;;  %v981_v53 = vpop.f32.mrf.mxu1  ;;  %v1040_v4 = vpop.f32.mrf.mxu2 }
 0x1b1   :  { %v3608_v5 = vadd.f32 %v1040_v4, %v1026_v25 }
 0x1b2   :  { %1470 = vmatpush.bf16.msra.mxu2 %v3261_v57  ;;  %1484 = vmatpush.bf16.msra.mxu0 %v3253_v47  ;;  %v995_v27 = vpop.f32.mrf.mxu3 }
 0x1b3   :  { %v996_v2 = vadd.f32 %v995_v27, %v981_v53 }
 0x1b4   :  { %1439 = vmatpush.bf16.msra.mxu1 %v3253_v47  ;;  %1425 = vmatpush.bf16.msra.mxu3 %v3261_v57 }
 0x1b5   :  { %v3612_v6 = vmax.f32 %v955_v43, %v996_v2  ;;  %v2292_v43 = vor.u32 %v2453_v40, %v2289_v41 }
 0x1b6   :  { %1471 = vmatpush.bf16.msra.mxu2 %v3279_v61  ;;  %1485 = vmatpush.bf16.msra.mxu0 %v3273_v60  ;;  %v1028_v11 = vpop.f32.mrf.mxu0 }
 0x1b7   :  { %v1045_v8 = vmax.f32 %v3612_v6, %v3608_v5 }
 0x1b8   :  { %1440 = vmatpush.bf16.msra.mxu1 %v3273_v60  ;;  %1426 = vmatpush.bf16.msra.mxu3 %v3279_v61  ;;  %v983_v23 = vpop.f32.mrf.mxu1  ;;  %v1042_v36 = vpop.f32.mrf.mxu2 }
 0x1b9   :  { %v3649_v54 = vadd.f32 %v1042_v36, %v1028_v11  ;;  %v2311_v11 = vld [vmem:[%s3888_s0 + $0x208] sm:$0xf0] }
 0x1ba   :  { %1472 = vmatpush.bf16.msra.mxu2 %v3293_v1  ;;  %1486 = vmatpush.bf16.msra.mxu0 %v3287_v62  ;;  %v997_v12 = vpop.f32.mrf.mxu3 }
 0x1bb   :  { %v998_v35 = vadd.f32 %v997_v12, %v983_v23  ;;  %v2460_v23 = vld [vmem:[%s3888_s0 + $0x214] sm:$0xf0]  ;;  %v2322_v12 = vld [vmem:[%s3888_s0 + $0x218] sm:$0xf0] }
 0x1bc   :  { %1441 = vmatpush.bf16.msra.mxu1 %v3287_v62  ;;  %1427 = vmatpush.bf16.msra.mxu3 %v3293_v1 }
 0x1bd   :  { %v3651_v56 = vmax.f32 %v956_v52, %v998_v35  ;;  %v2299_v52 = vor.u32 %v2456_v50, %v2298_v63 }
 0x1be   :  { %1473 = vmatpush.bf16.msra.mxu2 %v3309_v22  ;;  %1487 = vmatpush.bf16.msra.mxu0 %v3301_v20 }
 0x1bf   :  { %v1046_v37 = vmax.f32 %v3651_v56, %v3649_v54 }
 0x1c0   :  { %1442 = vmatpush.bf16.msra.mxu1 %v3301_v20  ;;  %1428 = vmatpush.bf16.msra.mxu3 %v3309_v22 }
 0x1c2   :  { %1474 = vmatpush.bf16.msra.mxu2 %v3351_v34  ;;  %1488 = vmatpush.bf16.msra.mxu0 %v3345_v15 }
 0x1c4   :  { %1443 = vmatpush.bf16.msra.mxu1 %v3345_v15  ;;  %1429 = vmatpush.bf16.msra.mxu3 %v3351_v34 }
 0x1c5   :  { %1475 = vmatmul.bf16.vlgmr.msra.gmra.mxu2 %v2277_v10  ;;  %2282 = vmatmul.msk.bf16.vlgmr.msra.gmra.mxu0 %vm154_vm1, %v2281_v33  ;;  %v2457_v10 = vld [vmem:[%s3888_s0 + $0x204] sm:$0xf] }
 0x1c6   :  { %1557 = vmatpush.bf16.msrb.mxu0 %v3216_v42  ;;  %1572 = vmatpush.bf16.msrb.mxu2 %v2548_v7 }
 0x1c7   :  { %1430 = vmatmul.bf16.vlgmr.msra.gmra.mxu3 %v2266_v21  ;;  %2271 = vmatmul.msk.bf16.vlgmr.msra.gmra.mxu1 %vm154_vm1, %v2270_v13  ;;  %v2320_v21 = vld [vmem:[%s3888_s0 + $0x210] sm:$0xf]  ;;  %v2459_v13 = vld [vmem:[%s3888_s0 + $0x214] sm:$0xf] }
 0x1c8   :  { %1512 = vmatpush.bf16.msrb.mxu1 %v3216_v42  ;;  %1527 = vmatpush.bf16.msrb.mxu3 %v2548_v7  ;;  %v2321_v54 = vor.u32 %v2460_v23, %v2320_v21 }
 0x1ca   :  { %1558 = vmatpush.bf16.msrb.mxu0 %v3229_v44  ;;  %1573 = vmatpush.bf16.msrb.mxu2 %v3237_v45  ;;  %v1130_v3 = vpop.f32.mrf.mxu0 }
 0x1cc   :  { %1513 = vmatpush.bf16.msrb.mxu1 %v3229_v44  ;;  %1528 = vmatpush.bf16.msrb.mxu3 %v3237_v45  ;;  %v1085_v0 = vpop.f32.mrf.mxu1 }
 0x1ce   :  { %1559 = vmatpush.bf16.msrb.mxu0 %v3243_v18  ;;  %1574 = vmatpush.bf16.msrb.mxu2 %v3253_v47 }
 0x1d0   :  { %1514 = vmatpush.bf16.msrb.mxu1 %v3243_v18  ;;  %1529 = vmatpush.bf16.msrb.mxu3 %v3253_v47  ;;  %v1116_v58 = vpop.f32.mrf.mxu2 }
 0x1d1   :  { %v3690_v19 = vadd.f32 %v1130_v3, %v1116_v58  ;;  %v2462_v58 = vld [vmem:[%s3888_s0 + $0x224] sm:$0xf0] }
 0x1d2   :  { %1560 = vmatpush.bf16.msrb.mxu0 %v3261_v57  ;;  %1575 = vmatpush.bf16.msrb.mxu2 %v3273_v60  ;;  %v1071_v16 = vpop.f32.mrf.mxu3  ;;  %v1132_v53 = vpop.f32.mrf.mxu0 }
 0x1d3   :  { %v1086_v46 = vadd.f32 %v1085_v0, %v1071_v16  ;;  %v2325_v0 = vor.u32 %v2459_v13, %v2322_v12  ;;  %v2355_v12 = vld [vmem:[%s3891_s3 + $0x8] sm:$0xf] }
 0x1d4   :  { %1515 = vmatpush.bf16.msrb.mxu1 %v3261_v57  ;;  %1530 = vmatpush.bf16.msrb.mxu3 %v3273_v60  ;;  %v1087_v14 = vpop.f32.mrf.mxu1 }
 0x1d5   :  { %v1090_v59 = vmax.f32 %v1045_v8, %v1086_v46  ;;  %v2309_v8 = vld [vmem:[%s3888_s0 + $0x200] sm:$0xf] }
 0x1d6   :  { %1561 = vmatpush.bf16.msrb.mxu0 %v3279_v61  ;;  %1576 = vmatpush.bf16.msrb.mxu2 %v3287_v62  ;;  %v2310_v35 = vor.u32 %v2458_v49, %v2309_v8 }
 0x1d7   :  { %v1135_v51 = vmax.f32 %v1090_v59, %v3690_v19 }
 0x1d8   :  { %1516 = vmatpush.bf16.msrb.mxu1 %v3279_v61  ;;  %1531 = vmatpush.bf16.msrb.mxu3 %v3287_v62  ;;  %v1118_v2 = vpop.f32.mrf.mxu2 }
 0x1d9   :  { %v1133_v4 = vadd.f32 %v1132_v53, %v1118_v2 }
 0x1da   :  { %1562 = vmatpush.bf16.msrb.mxu0 %v3293_v1  ;;  %1577 = vmatpush.bf16.msrb.mxu2 %v3301_v20  ;;  %v1073_v25 = vpop.f32.mrf.mxu3 }
 0x1db   :  { %v1088_v27 = vadd.f32 %v1087_v14, %v1073_v25 }
 0x1dc   :  { %1517 = vmatpush.bf16.msrb.mxu1 %v3293_v1  ;;  %1532 = vmatpush.bf16.msrb.mxu3 %v3301_v20 }
 0x1dd   :  { %v1091_v5 = vmax.f32 %v1046_v37, %v1088_v27  ;;  %v2314_v37 = vor.u32 %v2457_v10, %v2311_v11 }
 0x1de   :  { %1563 = vmatpush.bf16.msrb.mxu0 %v3309_v22  ;;  %1578 = vmatpush.bf16.msrb.mxu2 %v3345_v15 }
 0x1df   :  { %v1136_v6 = vmax.f32 %v1091_v5, %v1133_v4 }
 0x1e0   :  { %1518 = vmatpush.bf16.msrb.mxu1 %v3309_v22  ;;  %1533 = vmatpush.bf16.msrb.mxu3 %v3345_v15 }
 0x1e1   :  { %2304 = vmatmul.msk.bf16.vlgmr.msrb.gmra.mxu2 %vm154_vm1, %v2303_v17 }
 0x1e2   :  { %1647 = vmatpush.bf16.msra.mxu2 %v3216_v42  ;;  %1564 = vmatpush.bf16.msrb.mxu0 %v3351_v34 }
 0x1e3   :  { %2293 = vmatmul.msk.bf16.vlgmr.msrb.gmra.mxu3 %vm154_vm1, %v2292_v43  ;;  %v2342_v43 = vld [vmem:[%s3888_s0 + $0x230] sm:$0xf] }
 0x1e4   :  { %1602 = vmatpush.bf16.msra.mxu3 %v3216_v42  ;;  %1519 = vmatpush.bf16.msrb.mxu1 %v3351_v34 }
 0x1e5   :  { %1565 = vmatmul.bf16.vlgmr.msrb.gmra.mxu0 %v2299_v52 }
 0x1e6   :  { %1648 = vmatpush.bf16.msra.mxu2 %v3229_v44  ;;  %1662 = vmatpush.bf16.msra.mxu0 %v2548_v7 }
 0x1e7   :  { %1520 = vmatmul.bf16.vlgmr.msrb.gmra.mxu1 %v2288_v39 }
 0x1e8   :  { %1603 = vmatpush.bf16.msra.mxu3 %v3229_v44  ;;  %1617 = vmatpush.bf16.msra.mxu1 %v2548_v7 }
 0x1ea   :  { %1649 = vmatpush.bf16.msra.mxu2 %v3243_v18  ;;  %1663 = vmatpush.bf16.msra.mxu0 %v3237_v45  ;;  %v1206_v29 = vpop.f32.mrf.mxu0 }
 0x1ec   :  { %1604 = vmatpush.bf16.msra.mxu3 %v3243_v18  ;;  %1618 = vmatpush.bf16.msra.mxu1 %v3237_v45  ;;  %v1161_v24 = vpop.f32.mrf.mxu1  ;;  %v1220_v28 = vpop.f32.mrf.mxu2 }
 0x1ed   :  { %v3736_v31 = vadd.f32 %v1220_v28, %v1206_v29 }
 0x1ee   :  { %1650 = vmatpush.bf16.msra.mxu2 %v3261_v57  ;;  %1664 = vmatpush.bf16.msra.mxu0 %v3253_v47  ;;  %v1175_v30 = vpop.f32.mrf.mxu3 }
 0x1ef   :  { %v1176_v26 = vadd.f32 %v1175_v30, %v1161_v24 }
 0x1f0   :  { %1605 = vmatpush.bf16.msra.mxu3 %v3261_v57  ;;  %1619 = vmatpush.bf16.msra.mxu1 %v3253_v47 }
 0x1f1   :  { %v3746_v55 = vmax.f32 %v1135_v51, %v1176_v26 }
 0x1f2   :  { %1651 = vmatpush.bf16.msra.mxu2 %v3279_v61  ;;  %1665 = vmatpush.bf16.msra.mxu0 %v3273_v60  ;;  %v1208_v56 = vpop.f32.mrf.mxu0 }
 0x1f3   :  { %v1225_v33 = vmax.f32 %v3746_v55, %v3736_v31 }
 0x1f4   :  { %1606 = vmatpush.bf16.msra.mxu3 %v3279_v61  ;;  %1620 = vmatpush.bf16.msra.mxu1 %v3273_v60  ;;  %v1163_v36 = vpop.f32.mrf.mxu1  ;;  %v1222_v41 = vpop.f32.mrf.mxu2 }
 0x1f5   :  { %v3776_v16 = vadd.f32 %v1222_v41, %v1208_v56 }
 0x1f6   :  { %1652 = vmatpush.bf16.msra.mxu2 %v3293_v1  ;;  %1666 = vmatpush.bf16.msra.mxu0 %v3287_v62  ;;  %v1177_v3 = vpop.f32.mrf.mxu3 }
 0x1f7   :  { %v1178_v40 = vadd.f32 %v1177_v3, %v1163_v36  ;;  %v2492_v36 = vmov 65535  }
 0x1f8   :  { %1607 = vmatpush.bf16.msra.mxu3 %v3293_v1  ;;  %1621 = vmatpush.bf16.msra.mxu1 %v3287_v62 }
 0x1f9   :  { %v3778_v32 = vmax.f32 %v1136_v6, %v1178_v40 }
 0x1fa   :  { %1653 = vmatpush.bf16.msra.mxu2 %v3309_v22  ;;  %1667 = vmatpush.bf16.msra.mxu0 %v3301_v20 }
 0x1fc   :  { %1608 = vmatpush.bf16.msra.mxu3 %v3309_v22  ;;  %1622 = vmatpush.bf16.msra.mxu1 %v3301_v20 }
 0x1fe   :  { %1654 = vmatpush.bf16.msra.mxu2 %v3351_v34  ;;  %1668 = vmatpush.bf16.msra.mxu0 %v3345_v15 }
 0x200   :  { %1609 = vmatpush.bf16.msra.mxu3 %v3351_v34  ;;  %1623 = vmatpush.bf16.msra.mxu1 %v3345_v15 }
 0x201   :  { %1655 = vmatmul.bf16.vlgmr.msra.gmra.mxu2 %v2321_v54  ;;  %2326 = vmatmul.msk.bf16.vlgmr.msra.gmra.mxu0 %vm154_vm1, %v2325_v0  ;;  %v1801_v54 = vsel %vm1799_vm2, 4294967295, %v2492_v36 }
 0x202   :  { %1737 = vmatpush.bf16.msrb.mxu0 %v3216_v42  ;;  %1752 = vmatpush.bf16.msrb.mxu2 %v2548_v7  ;;  %v1802_v0 = vsel %vm1800_vm3, %v1801_v54, 0 }
 0x203   :  { %1610 = vmatmul.bf16.vlgmr.msra.gmra.mxu3 %v2310_v35  ;;  %2315 = vmatmul.msk.bf16.vlgmr.msra.gmra.mxu1 %vm154_vm1, %v2314_v37 }
 0x204   :  { %1692 = vmatpush.bf16.msrb.mxu1 %v3216_v42  ;;  %1707 = vmatpush.bf16.msrb.mxu3 %v2548_v7  ;;  %v1226_v7 = vmax.f32 %v3778_v32, %v3776_v16 }
 0x206   :  { %1738 = vmatpush.bf16.msrb.mxu0 %v3229_v44  ;;  %1753 = vmatpush.bf16.msrb.mxu2 %v3237_v45 }
 0x208   :  { %1693 = vmatpush.bf16.msrb.mxu1 %v3229_v44  ;;  %1708 = vmatpush.bf16.msrb.mxu3 %v3237_v45  ;;  %v1265_v42 = vpop.f32.mrf.mxu1  ;;  %v1310_v44 = vpop.f32.mrf.mxu0  ;;  %v2461_v45 = vld [vmem:[%s3888_s0 + $0x224] sm:$0xf] }
 0x20a   :  { %1739 = vmatpush.bf16.msrb.mxu0 %v3243_v18  ;;  %1754 = vmatpush.bf16.msrb.mxu2 %v3253_v47 }
 0x20c   :  { %1694 = vmatpush.bf16.msrb.mxu1 %v3243_v18  ;;  %1709 = vmatpush.bf16.msrb.mxu3 %v3253_v47  ;;  %v2333_v18 = vld [vmem:[%s3888_s0 + $0x228] sm:$0xf0]  ;;  %v2463_v47 = vld [vmem:[%s3888_s0 + $0x234] sm:$0xf] }
 0x20d   :  { %v2336_v46 = vor.u32 %v2461_v45, %v2333_v18 }
 0x20e   :  { %1740 = vmatpush.bf16.msrb.mxu0 %v3261_v57  ;;  %1755 = vmatpush.bf16.msrb.mxu2 %v3273_v60 }
 0x210   :  { %1695 = vmatpush.bf16.msrb.mxu1 %v3261_v57  ;;  %1710 = vmatpush.bf16.msrb.mxu3 %v3273_v60  ;;  %v2344_v57 = vld [vmem:[%s3888_s0 + $0x238] sm:$0xf0]  ;;  %v1251_v60 = vpop.f32.mrf.mxu3  ;;  %v1312_v63 = vpop.f32.mrf.mxu0 }
 0x212   :  { %1741 = vmatpush.bf16.msrb.mxu0 %v3279_v61  ;;  %1756 = vmatpush.bf16.msrb.mxu2 %v3287_v62 }
 0x214   :  { %1696 = vmatpush.bf16.msrb.mxu1 %v3279_v61  ;;  %1711 = vmatpush.bf16.msrb.mxu3 %v3287_v62  ;;  %v1296_v61 = vpop.f32.mrf.mxu2  ;;  %v1266_v62 = vadd.f32 %v1265_v42, %v1251_v60 }
 0x215   :  { %v3816_v9 = vadd.f32 %v1310_v44, %v1296_v61 }
 0x216   :  { %1742 = vmatpush.bf16.msrb.mxu0 %v3293_v1  ;;  %1757 = vmatpush.bf16.msrb.mxu2 %v3301_v20  ;;  %v1270_v19 = vmax.f32 %v1225_v33, %v1266_v62  ;;  %v2466_v33 = vld [vmem:[%s3891_s3 + $0x8] sm:$0x30]  ;;  %v2465_v62 = vld [vmem:[%s3891_s3] sm:$0xff] }
 0x217   :  { %v2356_v35 = vor.u32 %v2466_v33, %v2355_v12 }
 0x218   :  { %1697 = vmatpush.bf16.msrb.mxu1 %v3293_v1  ;;  %1712 = vmatpush.bf16.msrb.mxu3 %v3301_v20  ;;  %v2347_v1 = vor.u32 %v2463_v47, %v2344_v57  ;;  %v2331_v20 = vld [vmem:[%s3888_s0 + $0x220] sm:$0xf]  ;;  %v1315_v59 = vmax.f32 %v1270_v19, %v3816_v9  ;;  %v1253_v38 = vpop.f32.mrf.mxu3 }
 0x219   :  { %v2332_v17 = vor.u32 %v2462_v58, %v2331_v20  ;;  %v1804_v42 = vand.u32 %v2356_v35, %v1802_v0  ;;  %v1833_v20 = vld [vmem:[%s3892_s5 + $0x28] sm:$0x3] }
 0x21a   :  { %1743 = vmatpush.bf16.msrb.mxu0 %v3309_v22  ;;  %1758 = vmatpush.bf16.msrb.mxu2 %v3345_v15  ;;  %v1859_v19 = vunpack.c.l.b16 %v1833_v20 }
 0x21c   :  { %1698 = vmatpush.bf16.msrb.mxu1 %v3309_v22  ;;  %1713 = vmatpush.bf16.msrb.mxu3 %v3345_v15  ;;  %v2343_v22 = vor.u32 %v2464_v48, %v2342_v43  ;;  %v1267_v15 = vpop.f32.mrf.mxu1  ;;  %v1298_v50 = vpop.f32.mrf.mxu2 }
 0x21d   :  { %2348 = vmatmul.msk.bf16.vlgmr.msrb.gmra.mxu2 %vm154_vm1, %v2347_v1  ;;  %v1268_v11 = vadd.f32 %v1267_v15, %v1253_v38  ;;  %v1313_v56 = vadd.f32 %v1312_v63, %v1298_v50 }
 0x21e   :  { %1744 = vmatpush.bf16.msrb.mxu0 %v3351_v34 }
 0x21f   :  { %2337 = vmatmul.msk.bf16.vlgmr.msrb.gmra.mxu3 %vm154_vm1, %v2336_v46  ;;  %v1271_v3 = vmax.f32 %v1226_v7, %v1268_v11 }
 0x220   :  { %1699 = vmatpush.bf16.msrb.mxu1 %v3351_v34  ;;  %1812 = vmatpush.bf16.msra.mxu3 %v1804_v42 }
 0x221   :  { %1745 = vmatmul.bf16.vlgmr.msrb.gmra.mxu0 %v2343_v22  ;;  %v1316_v60 = vmax.f32 %v1271_v3, %v1313_v56  ;;  %v1865_v22 = vpack.c.b16 %v1859_v19, %v1859_v19 }
 0x223   :  { %1700 = vmatmul.bf16.vlgmr.msrb.gmra.mxu1 %v2332_v17 }
 0x224   :  { %1813 = vmatpush.bf16.msra.mxu3 %v2465_v62 }
 0x226   :  { %v1386_v39 = vpop.f32.mrf.mxu0 }
 0x228   :  { %v1341_v51 = vpop.f32.mrf.mxu1  ;;  %v1400_v52 = vpop.f32.mrf.mxu2 }
 0x229   :  { %v1401_v41 = vadd.f32 %v1400_v52, %v1386_v39 }
 0x22a   :  { %v1355_v14 = vpop.f32.mrf.mxu3 }
 0x22b   :  { %v1356_v13 = vadd.f32 %v1355_v14, %v1341_v51  ;;  %v1877_v14 = vsel %vm1875_vm4, %v1865_v22, 0 }
 0x22c   :  { %1881 = vmatpush.bf16.msra.mxu1 %v1877_v14 }
 0x22d   :  { %v1360_v40 = vmax.f32 %v1315_v59, %v1356_v13 }
 0x22e   :  { %v1388_v27 = vpop.f32.mrf.mxu0 }
 0x22f   :  { %v1405_v61 = vmax.f32 %v1360_v40, %v1401_v41 }
 0x230   :  { %v1343_v53 = vpop.f32.mrf.mxu1  ;;  %v1402_v2 = vpop.f32.mrf.mxu2 }
 0x231   :  { %v1403_v46 = vadd.f32 %v1402_v2, %v1388_v27 }
 0x232   :  { %v1357_v25 = vpop.f32.mrf.mxu3 }
 0x233   :  { %v1358_v18 = vadd.f32 %v1357_v25, %v1343_v53  ;;  %v2471_v53 = vld [vmem:[%s3892_s5 + $0x20] sm:$0xff] }
 0x234   :  { %1882 = vmatpush.bf16.msra.mxu1 %v2471_v53 }
 0x235   :  { %v1361_v9 = vmax.f32 %v1316_v60, %v1358_v18  ;;  %v2469_v18 = vld [vmem:[%s3892_s5 + $0x10] sm:$0xff] }
 0x237   :  { %v1406_v43 = vmax.f32 %v1361_v9, %v1403_v46 }
 0x242   :  { %v1490_v6 = vpop.f32.mrf.mxu0 }
 0x244   :  { %v1445_v4 = vpop.f32.mrf.mxu1 }
 0x248   :  { %v1476_v24 = vpop.f32.mrf.mxu2 }
 0x249   :  { %v1491_v16 = vadd.f32 %v1490_v6, %v1476_v24 }
 0x24a   :  { %v1431_v5 = vpop.f32.mrf.mxu3  ;;  %v1492_v30 = vpop.f32.mrf.mxu0 }
 0x24b   :  { %v1446_v47 = vadd.f32 %v1445_v4, %v1431_v5 }
 0x24c   :  { %v1447_v29 = vpop.f32.mrf.mxu1 }
 0x24d   :  { %v1450_v1 = vmax.f32 %v1405_v61, %v1446_v47  ;;  %v2468_v47 = vld [vmem:[%s3892_s5 + $0x8] sm:$0xff]  ;;  %v2475_v61 = vld [vmem:[%s3890_s4] ss:$0 sm:$0xff] }
 0x24f   :  { %v1495_v48 = vmax.f32 %v1450_v1, %v1491_v16 }
 0x250   :  { %v1478_v26 = vpop.f32.mrf.mxu2 }
 0x251   :  { %v1493_v38 = vadd.f32 %v1492_v30, %v1478_v26 }
 0x252   :  { %v1433_v34 = vpop.f32.mrf.mxu3 }
 0x253   :  { %v1448_v32 = vadd.f32 %v1447_v29, %v1433_v34 }
 0x255   :  { %v1451_v15 = vmax.f32 %v1406_v43, %v1448_v32 }
 0x257   :  { %v1496_v25 = vmax.f32 %v1451_v15, %v1493_v38 }
 0x262   :  { %v1566_v8 = vpop.f32.mrf.mxu0 }
 0x264   :  { %v1521_v28 = vpop.f32.mrf.mxu1  ;;  %v1580_v49 = vpop.f32.mrf.mxu2 }
 0x265   :  { %v1581_v50 = vadd.f32 %v1580_v49, %v1566_v8 }
 0x266   :  { %v1535_v31 = vpop.f32.mrf.mxu3 }
 0x267   :  { %v1536_v7 = vadd.f32 %v1535_v31, %v1521_v28 }
 0x269   :  { %v1540_v63 = vmax.f32 %v1495_v48, %v1536_v7  ;;  %v2476_v7 = vld [vmem:[%s3893_s6] ss:$0 sm:$0xff] }
 0x26a   :  { %v1568_v23 = vpop.f32.mrf.mxu0 }
 0x26b   :  { %v1585_v27 = vmax.f32 %v1540_v63, %v1581_v50 }
 0x26c   :  { %v1523_v55 = vpop.f32.mrf.mxu1  ;;  %v1582_v10 = vpop.f32.mrf.mxu2 }
 0x26d   :  { %v1583_v5 = vadd.f32 %v1582_v10, %v1568_v23  ;;  %v2474_v23 = vld [vmem:[%s3889_s2] ss:$0 sm:$0xff] }
 0x26e   :  { %v1537_v21 = vpop.f32.mrf.mxu3 }
 0x26f   :  { %v1538_v39 = vadd.f32 %v1537_v21, %v1523_v55 }
 0x271   :  { %v1541_v4 = vmax.f32 %v1496_v25, %v1538_v39 }
 0x273   :  { %v1586_v31 = vmax.f32 %v1541_v4, %v1583_v5 }
 0x27e   :  { %v1670_v45 = vpop.f32.mrf.mxu0 }
 0x280   :  { %v1625_v37 = vpop.f32.mrf.mxu1 }
 0x284   :  { %v1656_v57 = vpop.f32.mrf.mxu2 }
 0x285   :  { %v1671_v24 = vadd.f32 %v1670_v45, %v1656_v57  ;;  %v2470_v45 = vld [vmem:[%s3892_s5 + $0x18] sm:$0xff]  ;;  %v2467_v57 = vld [vmem:[%s3892_s5] sm:$0xff] }
 0x286   :  { %v1611_v44 = vpop.f32.mrf.mxu3  ;;  %v1672_v17 = vpop.f32.mrf.mxu0  ;;  %1883 = vmatpush.bf16.msra.mxu1 %v2470_v45 }
 0x287   :  { %v1626_v52 = vadd.f32 %v1625_v37, %v1611_v44 }
 0x288   :  { %v1627_v58 = vpop.f32.mrf.mxu1 }
 0x289   :  { %v1630_v6 = vmax.f32 %v1585_v27, %v1626_v52 }
 0x28a   :  { %1884 = vmatpush.bf16.msra.mxu1 %v2469_v18 }
 0x28b   :  { %v1675_v8 = vmax.f32 %v1630_v6, %v1671_v24 }
 0x28c   :  { %v1658_v51 = vpop.f32.mrf.mxu2 }
 0x28d   :  { %v1673_v55 = vadd.f32 %v1672_v17, %v1658_v51 }
 0x28e   :  { %v1613_v59 = vpop.f32.mrf.mxu3  ;;  %1885 = vmatpush.bf16.msra.mxu1 %v2468_v47 }
 0x28f   :  { %v1628_v30 = vadd.f32 %v1627_v58, %v1613_v59 }
 0x291   :  { %v1631_v49 = vmax.f32 %v1586_v31, %v1628_v30 }
 0x292   :  { %1886 = vmatpush.bf16.msra.mxu1 %v2467_v57 }
 0x293   :  { %v1676_v33 = vmax.f32 %v1631_v49, %v1673_v55 }
 0x29e   :  { %v1746_v29 = vpop.f32.mrf.mxu0 }
 0x2a0   :  { %v1701_v2 = vpop.f32.mrf.mxu1  ;;  %v1760_v28 = vpop.f32.mrf.mxu2 }
 0x2a1   :  { %v1761_v11 = vadd.f32 %v1760_v28, %v1746_v29 }
 0x2a2   :  { %v1715_v34 = vpop.f32.mrf.mxu3 }
 0x2a3   :  { %v1716_v26 = vadd.f32 %v1715_v34, %v1701_v2 }
 0x2a5   :  { %v1720_v21 = vmax.f32 %v1675_v8, %v1716_v26 }
 0x2a6   :  { %v1748_v54 = vpop.f32.mrf.mxu0 }
 0x2a7   :  { %v1765_v35 = vmax.f32 %v1720_v21, %v1761_v11 }
 0x2a8   :  { %v1703_v13 = vpop.f32.mrf.mxu1  ;;  %v1762_v36 = vpop.f32.mrf.mxu2 }
 0x2a9   :  { %v1763_v37 = vadd.f32 %v1762_v36, %v1748_v54  ;;  %v1771_v0 = vadd.f32 %v2474_v23, %v1765_v35 }
 0x2aa   :  { %v1717_v12 = vpop.f32.mrf.mxu3 }
 0x2ab   :  { %v1718_v10 = vadd.f32 %v1717_v12, %v1703_v13  ;;  %v1773_v41 = vmax.f32 %v1771_v0, 0.0 }
 0x2ad   :  { %v1721_v56 = vmax.f32 %v1676_v33, %v1718_v10 }
 0x2af   :  { %v1766_v3 = vmax.f32 %v1721_v56, %v1763_v37 }
 0x2b1   :  { %v1772_v40 = vadd.f32 %v2474_v23, %v1766_v3 }
 0x2b3   :  { %v1774_v42 = vmax.f32 %v1772_v40, 0.0 }
 0x2b5   :  { %v1775_v44 = vpack.c.bf16 %v1774_v42, %v1773_v41 }
 0x2b7   :  { %2357 = vmatmul.msk.bf16.vlgmr.msra.gmra.mxu3 %vm1795_vm5, %v1775_v44 }
 0x33a   :  { %v1815_v60 = vpop.f32.mrf.mxu3 }
 0x33b   :  { %v1816_v62 = vadd.f32 %v2475_v61, %v1815_v60 }
 0x33d   :  { %v1820_v1 = vmax.f32 %v1816_v62, 0.0 }
 0x342   :  { %v1817_v9 = vpop.f32.mrf.mxu3 }
 0x343   :  { %v1818_v46 = vadd.f32 %v2475_v61, %v1817_v9 }
 0x345   :  { %v1821_v16 = vmax.f32 %v1818_v46, 0.0 }
 0x347   :  { %v1822_v32 = vpack.c.bf16 %v1821_v16, %v1820_v1 }
 0x349   :  { %2378 = vmatmul.msk.bf16.vlgmr.msra.gmra.mxu1 %vm1871_vm6, %v1822_v32 }
 0x3c6   :  { %v1888_v20 = vpop.f32.mrf.mxu1 }
 0x3c7   :  { %v1889_v58 = vadd.f32 %v2476_v7, %v1888_v20 }
 0x3c9   :  { %1893 = vst [vmem:[%s3894_s7] sm:$0xff] %v1889_v58 }
 0x3ce   :  { %v1890_v19 = vpop.f32.mrf.mxu1 }
 0x3cf   :  { %v1891_v43 = vadd.f32 %v2476_v7, %v1890_v19 }
 0x3d1   :  { %1894 = vst [vmem:[%s3894_s7 + $0x8] sm:$0xff] %v1891_v43 }

</bundles_post_ra>
